<compile_context>
chip_gen: v5e
topology: v5e:2x2
jax: 0.10.0
libtpu: 0.0.40
codegen_flags: <defaults>
</compile_context>

<pallas_src>
import functools

import jax
import jax.numpy as jnp
from jax import lax
from jax.experimental import pallas as pl
from jax.experimental.pallas import tpu as pltpu


# ----------------------------------------------------------------------------
# Fused CBAM kernel: one block of TB batch elements per grid step.
#   convw_ref   : (14, 7)  f32  -- 7x7 conv taps; row 2*kh = max-chan, 2*kh+1 = mean-chan
#   rowmask_ref : (14, HW) f32  -- row-validity of tap kh (rows 2kh, 2kh+1 identical)
#   colmask_ref : (7,  HW) f32  -- col-validity of tap kw
#   x_ref       : (TB, C, HW)
#   w1t_ref     : (C, hid)      -- fc1 weight transposed
#   b1_ref      : (1, hid)
#   w2t_ref     : (hid, C)      -- fc2 weight transposed
#   b2_ref      : (1, C)
#   o_ref       : (TB, C, HW)
# ----------------------------------------------------------------------------
def _cbam_kernel(convw_ref, rowmask_ref, colmask_ref, x_ref,
                 w1t_ref, b1_ref, w2t_ref, b2_ref, o_ref, *, width):
    TB, C, HW = x_ref.shape
    x = x_ref[...].astype(jnp.float32)                     # (TB, C, HW), lane-dense

    # ---------------- channel gate (batched over TB -> MXU matmuls) --------
    avg = jnp.mean(x, axis=2)                              # (TB, C) == avg_pool2d
    mxp = jnp.max(x, axis=2)                               # (TB, C) == max_pool2d
    w1t = w1t_ref[...]                                     # (C, hid)
    b1 = b1_ref[...]                                       # (1, hid)
    h_a = jnp.maximum(
        jnp.dot(avg, w1t, preferred_element_type=jnp.float32) + b1, 0.0)
    h_m = jnp.maximum(
        jnp.dot(mxp, w1t, preferred_element_type=jnp.float32) + b1, 0.0)
    # mlp(avg) + mlp(max) == W2 @ (relu(h_a) + relu(h_m)) + 2*b2
    att = jnp.dot(h_a + h_m, w2t_ref[...],
                  preferred_element_type=jnp.float32) + 2.0 * b2_ref[...]
    cscale = jax.nn.sigmoid(att)                           # (TB, C)
    y = x * cscale[:, :, None]                             # (TB, C, HW) channel-gated

    # ---------------- spatial gate ------------------------------------------
    convw = convw_ref[...]                                 # (14, 7)
    rowmask = rowmask_ref[...]                             # (14, HW)
    colmask = colmask_ref[...]                             # (7, HW)

    for bb in range(TB):                                   # static unroll (TB small)
        y_b = y[bb]                                        # (C, HW)
        # channel pool: max & mean over C (vectorized sublane reductions)
        mxc = jnp.max(y_b, axis=0, keepdims=True)          # (1, HW)
        mnc = jnp.mean(y_b, axis=0, keepdims=True)         # (1, HW)
        pooled = jnp.concatenate([mxc, mnc], axis=0)       # (2, HW): row0=max, row1=mean

        # Sublane-packed stack of the 7 row-shifted copies (rows ordered
        # [max_kh0, mean_kh0, max_kh1, mean_kh1, ...]); row masks folded once.
        rows = []
        for kh in range(7):
            shift1 = (-(kh - 3) * width) % HW
            rows.append(pooled if shift1 == 0
                        else pltpu.roll(pooled, shift=shift1, axis=1))
        stack = jnp.concatenate(rows, axis=0) * rowmask    # (14, HW)

        # 7 kw taps: one full-stack lane roll + weighted sublane reduce each.
        accs = []
        for kw in range(7):
            shift2 = (-(kw - 3)) % HW
            rolled = stack if shift2 == 0 else pltpu.roll(stack, shift=shift2, axis=1)
            wcol = convw[:, kw:kw + 1]                     # (14, 1) tap weights
            contrib = jnp.sum(rolled * wcol, axis=0, keepdims=True)   # (1, HW)
            accs.append(contrib * colmask[kw:kw + 1, :])
        # balanced tree-sum -> short VALU dependency chain
        while len(accs) > 1:
            nxt = [accs[i] + accs[i + 1] for i in range(0, len(accs) - 1, 2)]
            if len(accs) % 2:
                nxt.append(accs[-1])
            accs = nxt

        sscale = jax.nn.sigmoid(accs[0])                   # (1, HW)
        o_ref[bb] = (y_b * sscale).astype(o_ref.dtype)     # lane-dense store


# ----------------------------------------------------------------------------
# Batch-block size selection: largest divisor of B whose f32 block fits a
# conservative per-block VMEM budget (v7x-safe), keeping >=4 grid steps for
# megacore pipelining once B is large enough.
# ----------------------------------------------------------------------------
def _pick_tb(B, C, HW):
    per_b_bytes = C * HW * 4
    budget_bytes = 4 << 20                                  # ~4 MiB per live block
    cap = max(1, budget_bytes // max(per_b_bytes, 1))
    tb = 1
    for d in range(1, B + 1):
        if B % d == 0 and d <= cap:
            tb = d
    if B >= 4:
        while tb > 1 and (B // tb) < 4:
            d = tb - 1
            while d > 1 and B % d != 0:
                d -= 1
            tb = d
    return tb


# ----------------------------------------------------------------------------
# Wrapper: repack weights, build conv boundary masks, launch the fused kernel.
# ----------------------------------------------------------------------------
def cbam_forward(x, fc1_w, fc1_b, fc2_w, fc2_b, conv_w, *, block_b=None):
    B, C, H, W = x.shape
    HW = H * W
    hid = fc1_w.shape[0]
    # TODO(synk): pad HW to a multiple of 128 for spatial shapes where H*W % 128 != 0
    # (otherwise the output store degrades to masked partial vst).

    TB = block_b if block_b is not None else _pick_tb(B, C, HW)
    assert B % TB == 0, "block_b must divide the batch size"

    xf = x.reshape(B, C, HW)

    # Validity masks for the zero-padded 7x7 conv on the flattened (·, HW) maps.
    idx = jnp.arange(HW, dtype=jnp.int32)
    ri = idx // W
    ci = idx % W
    row_masks = jnp.stack(
        [((ri + (kh - 3) >= 0) & (ri + (kh - 3) < H)) for kh in range(7)], axis=0
    ).astype(jnp.float32)                                   # (7, HW)
    col_masks = jnp.stack(
        [((ci + (kw - 3) >= 0) & (ci + (kw - 3) < W)) for kw in range(7)], axis=0
    ).astype(jnp.float32)                                   # (7, HW)
    row_masks = jnp.repeat(row_masks, 2, axis=0)            # (14, HW): rows 2kh, 2kh+1

    # (14, 7): row 2*kh = max-channel taps of kernel row kh, row 2*kh+1 = mean-channel.
    convw = jnp.stack([conv_w[0, 0], conv_w[0, 1]], axis=1).reshape(14, 7)
    convw = convw.astype(jnp.float32)

    kernel = functools.partial(_cbam_kernel, width=W)

    out = pl.pallas_call(
        kernel,
        out_shape=jax.ShapeDtypeStruct((B, C, HW), x.dtype),
        grid_spec=pltpu.PrefetchScalarGridSpec(
            num_scalar_prefetch=0,
            grid=(B // TB,),
            in_specs=[
                pl.BlockSpec((14, 7), lambda b: (0, 0)),        # conv tap weights
                pl.BlockSpec((14, HW), lambda b: (0, 0)),       # row-validity masks
                pl.BlockSpec((7, HW), lambda b: (0, 0)),        # col-validity masks
                pl.BlockSpec((TB, C, HW), lambda b: (b, 0, 0)), # x block
                pl.BlockSpec((C, hid), lambda b: (0, 0)),       # fc1_w.T
                pl.BlockSpec((1, hid), lambda b: (0, 0)),       # fc1_b
                pl.BlockSpec((hid, C), lambda b: (0, 0)),       # fc2_w.T
                pl.BlockSpec((1, C), lambda b: (0, 0)),         # fc2_b
            ],
            out_specs=pl.BlockSpec((TB, C, HW), lambda b: (b, 0, 0)),
        ),
        compiler_params=pltpu.CompilerParams(
            dimension_semantics=("parallel",),
        ),
    )(
        convw,
        row_masks,
        col_masks,
        xf,
        fc1_w.T.astype(jnp.float32),              # (C, hid)
        fc1_b.reshape(1, hid).astype(jnp.float32),
        fc2_w.T.astype(jnp.float32),              # (hid, C)
        fc2_b.reshape(1, C).astype(jnp.float32),
    )
    return out.reshape(B, C, H, W)


# ----------------------------------------------------------------------------
# Pure-JAX reference (mirrors the PyTorch module) for validation.
# ----------------------------------------------------------------------------
def cbam_reference(x, fc1_w, fc1_b, fc2_w, fc2_b, conv_w):
    avg = jnp.mean(x, axis=(2, 3))                          # (B, C)
    mxp = jnp.max(x, axis=(2, 3))                           # (B, C)

    def mlp(p):
        h = jnp.maximum(p @ fc1_w.T + fc1_b, 0.0)
        return h @ fc2_w.T + fc2_b

    att = mlp(avg) + mlp(mxp)
    cscale = jax.nn.sigmoid(att)[:, :, None, None]
    y = x * cscale

    maxc = jnp.max(y, axis=1, keepdims=True)
    meanc = jnp.mean(y, axis=1, keepdims=True)
    pooled = jnp.concatenate([maxc, meanc], axis=1)         # (B, 2, H, W)
    conv = lax.conv_general_dilated(
        pooled, conv_w, window_strides=(1, 1), padding=[(3, 3), (3, 3)],
        dimension_numbers=("NCHW", "OIHW", "NCHW"))
    sscale = jax.nn.sigmoid(conv)
    return y * sscale


if __name__ == "__main__":
    B, C, H, W = 2, 32, 16, 16
    reduction_ratio = 16
    hid = C // reduction_ratio

    key = jax.random.PRNGKey(0)
    kx, k1, k2, k3, k4, k5 = jax.random.split(key, 6)
    x = jax.random.normal(kx, (B, C, H, W), jnp.float32)
    fc1_w = jax.random.normal(k1, (hid, C), jnp.float32) * 0.2       # Linear(C, C//16)
    fc1_b = jax.random.normal(k2, (hid,), jnp.float32) * 0.1
    fc2_w = jax.random.normal(k3, (C, hid), jnp.float32) * 0.2       # Linear(C//16, C)
    fc2_b = jax.random.normal(k4, (C,), jnp.float32) * 0.1
    conv_w = jax.random.normal(k5, (1, 2, 7, 7), jnp.float32) * 0.1  # Conv2d(2,1,7,bias=False)

    out = cbam_forward(x, fc1_w, fc1_b, fc2_w, fc2_b, conv_w)
    out = jax.block_until_ready(out)

    ref = cbam_reference(x, fc1_w, fc1_b, fc2_w, fc2_b, conv_w)
    assert out.shape == x.shape and out.dtype == x.dtype
    if not jnp.allclose(out, ref, atol=1e-4, rtol=1e-4):
        max_err = float(jnp.max(jnp.abs(out - ref)))
        raise AssertionError(f"Pallas CBAM mismatch vs reference, max abs err = {max_err}")

    print("KERNEL_OK")
</pallas_src>

<mosaic_0001>
module attributes {stable_mosaic.version = 11 : i64} {
  func.func @_cbam_kernel(%arg0: i32, %arg1: memref<14x7xf32, #tpu.memory_space<vmem>>, %arg2: memref<14x256xf32, #tpu.memory_space<vmem>>, %arg3: memref<7x256xf32, #tpu.memory_space<vmem>>, %arg4: memref<2x32x256xf32, #tpu.memory_space<vmem>>, %arg5: memref<32x2xf32, #tpu.memory_space<vmem>>, %arg6: memref<1x2xf32, #tpu.memory_space<vmem>>, %arg7: memref<2x32xf32, #tpu.memory_space<vmem>>, %arg8: memref<1x32xf32, #tpu.memory_space<vmem>>, %arg9: memref<2x32x256xf32, #tpu.memory_space<vmem>>) attributes {dimension_semantics = [#tpu.dimension_semantics<parallel>], iteration_bounds = array<i64: 1>, scalar_prefetch = 0 : i64, scratch_operands = 0 : i64, tpu.core_type = #tpu.core_type<tc>, window_params = [{pipeline_mode = #tpu.pipeline_mode<synchronous>, transform_indices = @transform_0, window_bounds = array<i64: 14, 7>}, {pipeline_mode = #tpu.pipeline_mode<synchronous>, transform_indices = @transform_1, window_bounds = array<i64: 14, 256>}, {pipeline_mode = #tpu.pipeline_mode<synchronous>, transform_indices = @transform_2, window_bounds = array<i64: 7, 256>}, {transform_indices = @transform_3, window_bounds = array<i64: 2, 32, 256>}, {pipeline_mode = #tpu.pipeline_mode<synchronous>, transform_indices = @transform_4, window_bounds = array<i64: 32, 2>}, {pipeline_mode = #tpu.pipeline_mode<synchronous>, transform_indices = @transform_5, window_bounds = array<i64: 1, 2>}, {pipeline_mode = #tpu.pipeline_mode<synchronous>, transform_indices = @transform_6, window_bounds = array<i64: 2, 32>}, {pipeline_mode = #tpu.pipeline_mode<synchronous>, transform_indices = @transform_7, window_bounds = array<i64: 1, 32>}, {transform_indices = @transform_8, window_bounds = array<i64: 2, 32, 256>}]} {
    %c0 = arith.constant 0 : index
    %c0_0 = arith.constant 0 : index
    %c0_1 = arith.constant 0 : index
    %0 = vector.load %arg4[%c0, %c0_0, %c0_1] : memref<2x32x256xf32, #tpu.memory_space<vmem>>, vector<2x32x256xf32>
    %cst = arith.constant dense<0.000000e+00> : vector<2x32xf32>
    %1 = vector.multi_reduction <add>, %0, %cst [2] : vector<2x32x256xf32> to vector<2x32xf32>
    %cst_2 = arith.constant 2.560000e+02 : f32
    %2 = vector.broadcast %cst_2 : f32 to vector<2x32xf32>
    %3 = arith.divf %1, %2 : vector<2x32xf32>
    %cst_3 = arith.constant dense<0xFF800000> : vector<2x32xf32>
    %4 = vector.multi_reduction <maximumf>, %0, %cst_3 [2] : vector<2x32x256xf32> to vector<2x32xf32>
    %c0_4 = arith.constant 0 : index
    %c0_5 = arith.constant 0 : index
    %5 = vector.load %arg5[%c0_4, %c0_5] : memref<32x2xf32, #tpu.memory_space<vmem>>, vector<32x2xf32>
    %c0_6 = arith.constant 0 : index
    %c0_7 = arith.constant 0 : index
    %6 = vector.load %arg6[%c0_6, %c0_7] : memref<1x2xf32, #tpu.memory_space<vmem>>, vector<1x2xf32>
    %cst_8 = arith.constant dense<0.000000e+00> : vector<2x2xf32>
    %7 = tpu.matmul %3, %5, %cst_8 {dimension_numbers = #tpu.dot_dimension_numbers<[1], [0], [0], [1], [0, 0, 1, 1], [], []>} : vector<2x32xf32>, vector<32x2xf32>, vector<2x2xf32> -> vector<2x2xf32>
    %8 = vector.broadcast %6 : vector<1x2xf32> to vector<2x2xf32>
    %9 = arith.addf %7, %8 : vector<2x2xf32>
    %cst_9 = arith.constant 0.000000e+00 : f32
    %10 = vector.broadcast %cst_9 : f32 to vector<2x2xf32>
    %11 = arith.maximumf %9, %10 : vector<2x2xf32>
    %cst_10 = arith.constant dense<0.000000e+00> : vector<2x2xf32>
    %12 = tpu.matmul %4, %5, %cst_10 {dimension_numbers = #tpu.dot_dimension_numbers<[1], [0], [0], [1], [0, 0, 1, 1], [], []>} : vector<2x32xf32>, vector<32x2xf32>, vector<2x2xf32> -> vector<2x2xf32>
    %13 = vector.broadcast %6 : vector<1x2xf32> to vector<2x2xf32>
    %14 = arith.addf %12, %13 : vector<2x2xf32>
    %cst_11 = arith.constant 0.000000e+00 : f32
    %15 = vector.broadcast %cst_11 : f32 to vector<2x2xf32>
    %16 = arith.maximumf %14, %15 : vector<2x2xf32>
    %17 = arith.addf %11, %16 : vector<2x2xf32>
    %c0_12 = arith.constant 0 : index
    %c0_13 = arith.constant 0 : index
    %18 = vector.load %arg7[%c0_12, %c0_13] : memref<2x32xf32, #tpu.memory_space<vmem>>, vector<2x32xf32>
    %cst_14 = arith.constant dense<0.000000e+00> : vector<2x32xf32>
    %19 = tpu.matmul %17, %18, %cst_14 {dimension_numbers = #tpu.dot_dimension_numbers<[1], [0], [0], [1], [0, 0, 1, 1], [], []>} : vector<2x2xf32>, vector<2x32xf32>, vector<2x32xf32> -> vector<2x32xf32>
    %c0_15 = arith.constant 0 : index
    %c0_16 = arith.constant 0 : index
    %20 = vector.load %arg8[%c0_15, %c0_16] : memref<1x32xf32, #tpu.memory_space<vmem>>, vector<1x32xf32>
    %cst_17 = arith.constant 2.000000e+00 : f32
    %21 = vector.broadcast %cst_17 : f32 to vector<1x32xf32>
    %22 = arith.mulf %21, %20 : vector<1x32xf32>
    %23 = vector.broadcast %22 : vector<1x32xf32> to vector<2x32xf32>
    %24 = arith.addf %19, %23 : vector<2x32xf32>
    %25 = arith.negf %24 : vector<2x32xf32>
    %26 = math.exp %25 : vector<2x32xf32>
    %cst_18 = arith.constant 1.000000e+00 : f32
    %27 = vector.broadcast %cst_18 : f32 to vector<2x32xf32>
    %28 = arith.addf %27, %26 : vector<2x32xf32>
    %29 = arith.divf %27, %28 : vector<2x32xf32>
    %30 = vector.shape_cast %29 : vector<2x32xf32> to vector<2x32x1xf32>
    %31 = vector.broadcast %30 : vector<2x32x1xf32> to vector<2x32x256xf32>
    %32 = arith.mulf %0, %31 : vector<2x32x256xf32>
    %c0_19 = arith.constant 0 : index
    %c0_20 = arith.constant 0 : index
    %33 = vector.load %arg1[%c0_19, %c0_20] : memref<14x7xf32, #tpu.memory_space<vmem>>, vector<14x7xf32>
    %c0_21 = arith.constant 0 : index
    %c0_22 = arith.constant 0 : index
    %34 = vector.load %arg2[%c0_21, %c0_22] : memref<14x256xf32, #tpu.memory_space<vmem>>, vector<14x256xf32>
    %c0_23 = arith.constant 0 : index
    %c0_24 = arith.constant 0 : index
    %35 = vector.load %arg3[%c0_23, %c0_24] : memref<7x256xf32, #tpu.memory_space<vmem>>, vector<7x256xf32>
    %36 = vector.extract_strided_slice %32 {offsets = [0, 0, 0], sizes = [1, 32, 256], strides = [1, 1, 1]} : vector<2x32x256xf32> to vector<1x32x256xf32>
    %37 = vector.shape_cast %36 : vector<1x32x256xf32> to vector<32x256xf32>
    %cst_25 = arith.constant dense<0xFF800000> : vector<256xf32>
    %38 = vector.multi_reduction <maximumf>, %37, %cst_25 [0] : vector<32x256xf32> to vector<256xf32>
    %39 = vector.shape_cast %38 : vector<256xf32> to vector<1x256xf32>
    %cst_26 = arith.constant dense<0.000000e+00> : vector<256xf32>
    %40 = vector.multi_reduction <add>, %37, %cst_26 [0] : vector<32x256xf32> to vector<256xf32>
    %41 = vector.shape_cast %40 : vector<256xf32> to vector<1x256xf32>
    %cst_27 = arith.constant 3.200000e+01 : f32
    %42 = vector.broadcast %cst_27 : f32 to vector<1x256xf32>
    %43 = arith.divf %41, %42 : vector<1x256xf32>
    %44 = tpu.concatenate %39, %43 in 0 : vector<1x256xf32>, vector<1x256xf32> -> vector<2x256xf32>
    %c48_i32 = arith.constant 48 : i32
    %45 = tpu.dynamic_rotate %44 by %c48_i32 dim 1 : vector<2x256xf32>, i32 -> vector<2x256xf32>
    %c32_i32 = arith.constant 32 : i32
    %46 = tpu.dynamic_rotate %44 by %c32_i32 dim 1 : vector<2x256xf32>, i32 -> vector<2x256xf32>
    %c16_i32 = arith.constant 16 : i32
    %47 = tpu.dynamic_rotate %44 by %c16_i32 dim 1 : vector<2x256xf32>, i32 -> vector<2x256xf32>
    %c240_i32 = arith.constant 240 : i32
    %48 = tpu.dynamic_rotate %44 by %c240_i32 dim 1 : vector<2x256xf32>, i32 -> vector<2x256xf32>
    %c224_i32 = arith.constant 224 : i32
    %49 = tpu.dynamic_rotate %44 by %c224_i32 dim 1 : vector<2x256xf32>, i32 -> vector<2x256xf32>
    %c208_i32 = arith.constant 208 : i32
    %50 = tpu.dynamic_rotate %44 by %c208_i32 dim 1 : vector<2x256xf32>, i32 -> vector<2x256xf32>
    %51 = tpu.concatenate %45, %46, %47, %44, %48, %49, %50 in 0 : vector<2x256xf32>, vector<2x256xf32>, vector<2x256xf32>, vector<2x256xf32>, vector<2x256xf32>, vector<2x256xf32>, vector<2x256xf32> -> vector<14x256xf32>
    %52 = arith.mulf %51, %34 : vector<14x256xf32>
    %c3_i32 = arith.constant 3 : i32
    %53 = tpu.dynamic_rotate %52 by %c3_i32 dim 1 : vector<14x256xf32>, i32 -> vector<14x256xf32>
    %54 = vector.extract_strided_slice %33 {offsets = [0, 0], sizes = [14, 1], strides = [1, 1]} : vector<14x7xf32> to vector<14x1xf32>
    %55 = vector.broadcast %54 : vector<14x1xf32> to vector<14x256xf32>
    %56 = arith.mulf %53, %55 : vector<14x256xf32>
    %cst_28 = arith.constant dense<0.000000e+00> : vector<256xf32>
    %57 = vector.multi_reduction <add>, %56, %cst_28 [0] : vector<14x256xf32> to vector<256xf32>
    %58 = vector.shape_cast %57 : vector<256xf32> to vector<1x256xf32>
    %59 = vector.extract_strided_slice %35 {offsets = [0, 0], sizes = [1, 256], strides = [1, 1]} : vector<7x256xf32> to vector<1x256xf32>
    %60 = arith.mulf %58, %59 : vector<1x256xf32>
    %c2_i32 = arith.constant 2 : i32
    %61 = tpu.dynamic_rotate %52 by %c2_i32 dim 1 : vector<14x256xf32>, i32 -> vector<14x256xf32>
    %62 = vector.extract_strided_slice %33 {offsets = [0, 1], sizes = [14, 1], strides = [1, 1]} : vector<14x7xf32> to vector<14x1xf32>
    %63 = vector.broadcast %62 : vector<14x1xf32> to vector<14x256xf32>
    %64 = arith.mulf %61, %63 : vector<14x256xf32>
    %cst_29 = arith.constant dense<0.000000e+00> : vector<256xf32>
    %65 = vector.multi_reduction <add>, %64, %cst_29 [0] : vector<14x256xf32> to vector<256xf32>
    %66 = vector.shape_cast %65 : vector<256xf32> to vector<1x256xf32>
    %67 = vector.extract_strided_slice %35 {offsets = [1, 0], sizes = [1, 256], strides = [1, 1]} : vector<7x256xf32> to vector<1x256xf32>
    %68 = arith.mulf %66, %67 : vector<1x256xf32>
    %c1_i32 = arith.constant 1 : i32
    %69 = tpu.dynamic_rotate %52 by %c1_i32 dim 1 : vector<14x256xf32>, i32 -> vector<14x256xf32>
    %70 = vector.extract_strided_slice %33 {offsets = [0, 2], sizes = [14, 1], strides = [1, 1]} : vector<14x7xf32> to vector<14x1xf32>
    %71 = vector.broadcast %70 : vector<14x1xf32> to vector<14x256xf32>
    %72 = arith.mulf %69, %71 : vector<14x256xf32>
    %cst_30 = arith.constant dense<0.000000e+00> : vector<256xf32>
    %73 = vector.multi_reduction <add>, %72, %cst_30 [0] : vector<14x256xf32> to vector<256xf32>
    %74 = vector.shape_cast %73 : vector<256xf32> to vector<1x256xf32>
    %75 = vector.extract_strided_slice %35 {offsets = [2, 0], sizes = [1, 256], strides = [1, 1]} : vector<7x256xf32> to vector<1x256xf32>
    %76 = arith.mulf %74, %75 : vector<1x256xf32>
    %77 = vector.extract_strided_slice %33 {offsets = [0, 3], sizes = [14, 1], strides = [1, 1]} : vector<14x7xf32> to vector<14x1xf32>
    %78 = vector.broadcast %77 : vector<14x1xf32> to vector<14x256xf32>
    %79 = arith.mulf %52, %78 : vector<14x256xf32>
    %cst_31 = arith.constant dense<0.000000e+00> : vector<256xf32>
    %80 = vector.multi_reduction <add>, %79, %cst_31 [0] : vector<14x256xf32> to vector<256xf32>
    %81 = vector.shape_cast %80 : vector<256xf32> to vector<1x256xf32>
    %82 = vector.extract_strided_slice %35 {offsets = [3, 0], sizes = [1, 256], strides = [1, 1]} : vector<7x256xf32> to vector<1x256xf32>
    %83 = arith.mulf %81, %82 : vector<1x256xf32>
    %c255_i32 = arith.constant 255 : i32
    %84 = tpu.dynamic_rotate %52 by %c255_i32 dim 1 : vector<14x256xf32>, i32 -> vector<14x256xf32>
    %85 = vector.extract_strided_slice %33 {offsets = [0, 4], sizes = [14, 1], strides = [1, 1]} : vector<14x7xf32> to vector<14x1xf32>
    %86 = vector.broadcast %85 : vector<14x1xf32> to vector<14x256xf32>
    %87 = arith.mulf %84, %86 : vector<14x256xf32>
    %cst_32 = arith.constant dense<0.000000e+00> : vector<256xf32>
    %88 = vector.multi_reduction <add>, %87, %cst_32 [0] : vector<14x256xf32> to vector<256xf32>
    %89 = vector.shape_cast %88 : vector<256xf32> to vector<1x256xf32>
    %90 = vector.extract_strided_slice %35 {offsets = [4, 0], sizes = [1, 256], strides = [1, 1]} : vector<7x256xf32> to vector<1x256xf32>
    %91 = arith.mulf %89, %90 : vector<1x256xf32>
    %c254_i32 = arith.constant 254 : i32
    %92 = tpu.dynamic_rotate %52 by %c254_i32 dim 1 : vector<14x256xf32>, i32 -> vector<14x256xf32>
    %93 = vector.extract_strided_slice %33 {offsets = [0, 5], sizes = [14, 1], strides = [1, 1]} : vector<14x7xf32> to vector<14x1xf32>
    %94 = vector.broadcast %93 : vector<14x1xf32> to vector<14x256xf32>
    %95 = arith.mulf %92, %94 : vector<14x256xf32>
    %cst_33 = arith.constant dense<0.000000e+00> : vector<256xf32>
    %96 = vector.multi_reduction <add>, %95, %cst_33 [0] : vector<14x256xf32> to vector<256xf32>
    %97 = vector.shape_cast %96 : vector<256xf32> to vector<1x256xf32>
    %98 = vector.extract_strided_slice %35 {offsets = [5, 0], sizes = [1, 256], strides = [1, 1]} : vector<7x256xf32> to vector<1x256xf32>
    %99 = arith.mulf %97, %98 : vector<1x256xf32>
    %c253_i32 = arith.constant 253 : i32
    %100 = tpu.dynamic_rotate %52 by %c253_i32 dim 1 : vector<14x256xf32>, i32 -> vector<14x256xf32>
    %101 = vector.extract_strided_slice %33 {offsets = [0, 6], sizes = [14, 1], strides = [1, 1]} : vector<14x7xf32> to vector<14x1xf32>
    %102 = vector.broadcast %101 : vector<14x1xf32> to vector<14x256xf32>
    %103 = arith.mulf %100, %102 : vector<14x256xf32>
    %cst_34 = arith.constant dense<0.000000e+00> : vector<256xf32>
    %104 = vector.multi_reduction <add>, %103, %cst_34 [0] : vector<14x256xf32> to vector<256xf32>
    %105 = vector.shape_cast %104 : vector<256xf32> to vector<1x256xf32>
    %106 = vector.extract_strided_slice %35 {offsets = [6, 0], sizes = [1, 256], strides = [1, 1]} : vector<7x256xf32> to vector<1x256xf32>
    %107 = arith.mulf %105, %106 : vector<1x256xf32>
    %108 = arith.addf %60, %68 : vector<1x256xf32>
    %109 = arith.addf %76, %83 : vector<1x256xf32>
    %110 = arith.addf %91, %99 : vector<1x256xf32>
    %111 = arith.addf %108, %109 : vector<1x256xf32>
    %112 = arith.addf %110, %107 : vector<1x256xf32>
    %113 = arith.addf %111, %112 : vector<1x256xf32>
    %114 = arith.negf %113 : vector<1x256xf32>
    %115 = math.exp %114 : vector<1x256xf32>
    %cst_35 = arith.constant 1.000000e+00 : f32
    %116 = vector.broadcast %cst_35 : f32 to vector<1x256xf32>
    %117 = arith.addf %116, %115 : vector<1x256xf32>
    %118 = arith.divf %116, %117 : vector<1x256xf32>
    %119 = vector.broadcast %118 : vector<1x256xf32> to vector<32x256xf32>
    %120 = arith.mulf %37, %119 : vector<32x256xf32>
    %c0_36 = arith.constant 0 : index
    %c0_37 = arith.constant 0 : index
    %c0_38 = arith.constant 0 : index
    %121 = vector.load %arg9[%c0_36, %c0_37, %c0_38] : memref<2x32x256xf32, #tpu.memory_space<vmem>>, vector<1x32x256xf32>
    %122 = vector.shape_cast %121 : vector<1x32x256xf32> to vector<32x256xf32>
    %123 = vector.shape_cast %120 : vector<32x256xf32> to vector<1x32x256xf32>
    tpu.vector_store %arg9[%c0_36, %c0_37, %c0_38], %123 {strides = array<i32>} : memref<2x32x256xf32, #tpu.memory_space<vmem>>, vector<1x32x256xf32>,
    %124 = vector.extract_strided_slice %32 {offsets = [1, 0, 0], sizes = [1, 32, 256], strides = [1, 1, 1]} : vector<2x32x256xf32> to vector<1x32x256xf32>
    %125 = vector.shape_cast %124 : vector<1x32x256xf32> to vector<32x256xf32>
    %cst_39 = arith.constant dense<0xFF800000> : vector<256xf32>
    %126 = vector.multi_reduction <maximumf>, %125, %cst_39 [0] : vector<32x256xf32> to vector<256xf32>
    %127 = vector.shape_cast %126 : vector<256xf32> to vector<1x256xf32>
    %cst_40 = arith.constant dense<0.000000e+00> : vector<256xf32>
    %128 = vector.multi_reduction <add>, %125, %cst_40 [0] : vector<32x256xf32> to vector<256xf32>
    %129 = vector.shape_cast %128 : vector<256xf32> to vector<1x256xf32>
    %cst_41 = arith.constant 3.200000e+01 : f32
    %130 = vector.broadcast %cst_41 : f32 to vector<1x256xf32>
    %131 = arith.divf %129, %130 : vector<1x256xf32>
    %132 = tpu.concatenate %127, %131 in 0 : vector<1x256xf32>, vector<1x256xf32> -> vector<2x256xf32>
    %c48_i32_42 = arith.constant 48 : i32
    %133 = tpu.dynamic_rotate %132 by %c48_i32_42 dim 1 : vector<2x256xf32>, i32 -> vector<2x256xf32>
    %c32_i32_43 = arith.constant 32 : i32
    %134 = tpu.dynamic_rotate %132 by %c32_i32_43 dim 1 : vector<2x256xf32>, i32 -> vector<2x256xf32>
    %c16_i32_44 = arith.constant 16 : i32
    %135 = tpu.dynamic_rotate %132 by %c16_i32_44 dim 1 : vector<2x256xf32>, i32 -> vector<2x256xf32>
    %c240_i32_45 = arith.constant 240 : i32
    %136 = tpu.dynamic_rotate %132 by %c240_i32_45 dim 1 : vector<2x256xf32>, i32 -> vector<2x256xf32>
    %c224_i32_46 = arith.constant 224 : i32
    %137 = tpu.dynamic_rotate %132 by %c224_i32_46 dim 1 : vector<2x256xf32>, i32 -> vector<2x256xf32>
    %c208_i32_47 = arith.constant 208 : i32
    %138 = tpu.dynamic_rotate %132 by %c208_i32_47 dim 1 : vector<2x256xf32>, i32 -> vector<2x256xf32>
    %139 = tpu.concatenate %133, %134, %135, %132, %136, %137, %138 in 0 : vector<2x256xf32>, vector<2x256xf32>, vector<2x256xf32>, vector<2x256xf32>, vector<2x256xf32>, vector<2x256xf32>, vector<2x256xf32> -> vector<14x256xf32>
    %140 = arith.mulf %139, %34 : vector<14x256xf32>
    %c3_i32_48 = arith.constant 3 : i32
    %141 = tpu.dynamic_rotate %140 by %c3_i32_48 dim 1 : vector<14x256xf32>, i32 -> vector<14x256xf32>
    %142 = vector.extract_strided_slice %33 {offsets = [0, 0], sizes = [14, 1], strides = [1, 1]} : vector<14x7xf32> to vector<14x1xf32>
    %143 = vector.broadcast %142 : vector<14x1xf32> to vector<14x256xf32>
    %144 = arith.mulf %141, %143 : vector<14x256xf32>
    %cst_49 = arith.constant dense<0.000000e+00> : vector<256xf32>
    %145 = vector.multi_reduction <add>, %144, %cst_49 [0] : vector<14x256xf32> to vector<256xf32>
    %146 = vector.shape_cast %145 : vector<256xf32> to vector<1x256xf32>
    %147 = vector.extract_strided_slice %35 {offsets = [0, 0], sizes = [1, 256], strides = [1, 1]} : vector<7x256xf32> to vector<1x256xf32>
    %148 = arith.mulf %146, %147 : vector<1x256xf32>
    %c2_i32_50 = arith.constant 2 : i32
    %149 = tpu.dynamic_rotate %140 by %c2_i32_50 dim 1 : vector<14x256xf32>, i32 -> vector<14x256xf32>
    %150 = vector.extract_strided_slice %33 {offsets = [0, 1], sizes = [14, 1], strides = [1, 1]} : vector<14x7xf32> to vector<14x1xf32>
    %151 = vector.broadcast %150 : vector<14x1xf32> to vector<14x256xf32>
    %152 = arith.mulf %149, %151 : vector<14x256xf32>
    %cst_51 = arith.constant dense<0.000000e+00> : vector<256xf32>
    %153 = vector.multi_reduction <add>, %152, %cst_51 [0] : vector<14x256xf32> to vector<256xf32>
    %154 = vector.shape_cast %153 : vector<256xf32> to vector<1x256xf32>
    %155 = vector.extract_strided_slice %35 {offsets = [1, 0], sizes = [1, 256], strides = [1, 1]} : vector<7x256xf32> to vector<1x256xf32>
    %156 = arith.mulf %154, %155 : vector<1x256xf32>
    %c1_i32_52 = arith.constant 1 : i32
    %157 = tpu.dynamic_rotate %140 by %c1_i32_52 dim 1 : vector<14x256xf32>, i32 -> vector<14x256xf32>
    %158 = vector.extract_strided_slice %33 {offsets = [0, 2], sizes = [14, 1], strides = [1, 1]} : vector<14x7xf32> to vector<14x1xf32>
    %159 = vector.broadcast %158 : vector<14x1xf32> to vector<14x256xf32>
    %160 = arith.mulf %157, %159 : vector<14x256xf32>
    %cst_53 = arith.constant dense<0.000000e+00> : vector<256xf32>
    %161 = vector.multi_reduction <add>, %160, %cst_53 [0] : vector<14x256xf32> to vector<256xf32>
    %162 = vector.shape_cast %161 : vector<256xf32> to vector<1x256xf32>
    %163 = vector.extract_strided_slice %35 {offsets = [2, 0], sizes = [1, 256], strides = [1, 1]} : vector<7x256xf32> to vector<1x256xf32>
    %164 = arith.mulf %162, %163 : vector<1x256xf32>
    %165 = vector.extract_strided_slice %33 {offsets = [0, 3], sizes = [14, 1], strides = [1, 1]} : vector<14x7xf32> to vector<14x1xf32>
    %166 = vector.broadcast %165 : vector<14x1xf32> to vector<14x256xf32>
    %167 = arith.mulf %140, %166 : vector<14x256xf32>
    %cst_54 = arith.constant dense<0.000000e+00> : vector<256xf32>
    %168 = vector.multi_reduction <add>, %167, %cst_54 [0] : vector<14x256xf32> to vector<256xf32>
    %169 = vector.shape_cast %168 : vector<256xf32> to vector<1x256xf32>
    %170 = vector.extract_strided_slice %35 {offsets = [3, 0], sizes = [1, 256], strides = [1, 1]} : vector<7x256xf32> to vector<1x256xf32>
    %171 = arith.mulf %169, %170 : vector<1x256xf32>
    %c255_i32_55 = arith.constant 255 : i32
    %172 = tpu.dynamic_rotate %140 by %c255_i32_55 dim 1 : vector<14x256xf32>, i32 -> vector<14x256xf32>
    %173 = vector.extract_strided_slice %33 {offsets = [0, 4], sizes = [14, 1], strides = [1, 1]} : vector<14x7xf32> to vector<14x1xf32>
    %174 = vector.broadcast %173 : vector<14x1xf32> to vector<14x256xf32>
    %175 = arith.mulf %172, %174 : vector<14x256xf32>
    %cst_56 = arith.constant dense<0.000000e+00> : vector<256xf32>
    %176 = vector.multi_reduction <add>, %175, %cst_56 [0] : vector<14x256xf32> to vector<256xf32>
    %177 = vector.shape_cast %176 : vector<256xf32> to vector<1x256xf32>
    %178 = vector.extract_strided_slice %35 {offsets = [4, 0], sizes = [1, 256], strides = [1, 1]} : vector<7x256xf32> to vector<1x256xf32>
    %179 = arith.mulf %177, %178 : vector<1x256xf32>
    %c254_i32_57 = arith.constant 254 : i32
    %180 = tpu.dynamic_rotate %140 by %c254_i32_57 dim 1 : vector<14x256xf32>, i32 -> vector<14x256xf32>
    %181 = vector.extract_strided_slice %33 {offsets = [0, 5], sizes = [14, 1], strides = [1, 1]} : vector<14x7xf32> to vector<14x1xf32>
    %182 = vector.broadcast %181 : vector<14x1xf32> to vector<14x256xf32>
    %183 = arith.mulf %180, %182 : vector<14x256xf32>
    %cst_58 = arith.constant dense<0.000000e+00> : vector<256xf32>
    %184 = vector.multi_reduction <add>, %183, %cst_58 [0] : vector<14x256xf32> to vector<256xf32>
    %185 = vector.shape_cast %184 : vector<256xf32> to vector<1x256xf32>
    %186 = vector.extract_strided_slice %35 {offsets = [5, 0], sizes = [1, 256], strides = [1, 1]} : vector<7x256xf32> to vector<1x256xf32>
    %187 = arith.mulf %185, %186 : vector<1x256xf32>
    %c253_i32_59 = arith.constant 253 : i32
    %188 = tpu.dynamic_rotate %140 by %c253_i32_59 dim 1 : vector<14x256xf32>, i32 -> vector<14x256xf32>
    %189 = vector.extract_strided_slice %33 {offsets = [0, 6], sizes = [14, 1], strides = [1, 1]} : vector<14x7xf32> to vector<14x1xf32>
    %190 = vector.broadcast %189 : vector<14x1xf32> to vector<14x256xf32>
    %191 = arith.mulf %188, %190 : vector<14x256xf32>
    %cst_60 = arith.constant dense<0.000000e+00> : vector<256xf32>
    %192 = vector.multi_reduction <add>, %191, %cst_60 [0] : vector<14x256xf32> to vector<256xf32>
    %193 = vector.shape_cast %192 : vector<256xf32> to vector<1x256xf32>
    %194 = vector.extract_strided_slice %35 {offsets = [6, 0], sizes = [1, 256], strides = [1, 1]} : vector<7x256xf32> to vector<1x256xf32>
    %195 = arith.mulf %193, %194 : vector<1x256xf32>
    %196 = arith.addf %148, %156 : vector<1x256xf32>
    %197 = arith.addf %164, %171 : vector<1x256xf32>
    %198 = arith.addf %179, %187 : vector<1x256xf32>
    %199 = arith.addf %196, %197 : vector<1x256xf32>
    %200 = arith.addf %198, %195 : vector<1x256xf32>
    %201 = arith.addf %199, %200 : vector<1x256xf32>
    %202 = arith.negf %201 : vector<1x256xf32>
    %203 = math.exp %202 : vector<1x256xf32>
    %cst_61 = arith.constant 1.000000e+00 : f32
    %204 = vector.broadcast %cst_61 : f32 to vector<1x256xf32>
    %205 = arith.addf %204, %203 : vector<1x256xf32>
    %206 = arith.divf %204, %205 : vector<1x256xf32>
    %207 = vector.broadcast %206 : vector<1x256xf32> to vector<32x256xf32>
    %208 = arith.mulf %125, %207 : vector<32x256xf32>
    %c1 = arith.constant 1 : index
    %c0_62 = arith.constant 0 : index
    %c0_63 = arith.constant 0 : index
    %209 = vector.load %arg9[%c1, %c0_62, %c0_63] : memref<2x32x256xf32, #tpu.memory_space<vmem>>, vector<1x32x256xf32>
    %210 = vector.shape_cast %209 : vector<1x32x256xf32> to vector<32x256xf32>
    %211 = vector.shape_cast %208 : vector<32x256xf32> to vector<1x32x256xf32>
    tpu.vector_store %arg9[%c1, %c0_62, %c0_63], %211 {strides = array<i32>} : memref<2x32x256xf32, #tpu.memory_space<vmem>>, vector<1x32x256xf32>,
    return
  }
  func.func @transform_0(%arg0: i32) -> (i32, i32) {
    %c0_i32 = arith.constant 0 : i32
    %c0_i32_0 = arith.constant 0 : i32
    %c0_i32_1 = arith.constant 0 : i32
    return %c0_i32, %c0_i32_0 : i32, i32
  }
  func.func @transform_1(%arg0: i32) -> (i32, i32) {
    %c0_i32 = arith.constant 0 : i32
    %c0_i32_0 = arith.constant 0 : i32
    %c0_i32_1 = arith.constant 0 : i32
    return %c0_i32, %c0_i32_0 : i32, i32
  }
  func.func @transform_2(%arg0: i32) -> (i32, i32) {
    %c0_i32 = arith.constant 0 : i32
    %c0_i32_0 = arith.constant 0 : i32
    %c0_i32_1 = arith.constant 0 : i32
    return %c0_i32, %c0_i32_0 : i32, i32
  }
  func.func @transform_3(%arg0: i32) -> (i32, i32, i32) {
    %c0_i32 = arith.constant 0 : i32
    %c0_i32_0 = arith.constant 0 : i32
    %c0_i32_1 = arith.constant 0 : i32
    return %arg0, %c0_i32, %c0_i32_0 : i32, i32, i32
  }
  func.func @transform_4(%arg0: i32) -> (i32, i32) {
    %c0_i32 = arith.constant 0 : i32
    %c0_i32_0 = arith.constant 0 : i32
    %c0_i32_1 = arith.constant 0 : i32
    return %c0_i32, %c0_i32_0 : i32, i32
  }
  func.func @transform_5(%arg0: i32) -> (i32, i32) {
    %c0_i32 = arith.constant 0 : i32
    %c0_i32_0 = arith.constant 0 : i32
    %c0_i32_1 = arith.constant 0 : i32
    return %c0_i32, %c0_i32_0 : i32, i32
  }
  func.func @transform_6(%arg0: i32) -> (i32, i32) {
    %c0_i32 = arith.constant 0 : i32
    %c0_i32_0 = arith.constant 0 : i32
    %c0_i32_1 = arith.constant 0 : i32
    return %c0_i32, %c0_i32_0 : i32, i32
  }
  func.func @transform_7(%arg0: i32) -> (i32, i32) {
    %c0_i32 = arith.constant 0 : i32
    %c0_i32_0 = arith.constant 0 : i32
    %c0_i32_1 = arith.constant 0 : i32
    return %c0_i32, %c0_i32_0 : i32, i32
  }
  func.func @transform_8(%arg0: i32) -> (i32, i32, i32) {
    %c0_i32 = arith.constant 0 : i32
    %c0_i32_0 = arith.constant 0 : i32
    %c0_i32_1 = arith.constant 0 : i32
    return %arg0, %c0_i32, %c0_i32_0 : i32, i32, i32
  }
}

</mosaic_0001>

<bundles_post_ra>
// kernel: tpu_custom_call.1
= control target key start
LH: loop header
LB: loop body
LE: loop exit
PB: predicated region body
PF: predicated region fallthrough
CT: control target
= control target key end

     0   :  { %13 = vsyncpa [#allocation3], 0  ;;  %s2451_s0 = inlined_call_operand.vmem [shape: f32[14,7], index: 0, kind: input, shape index: {}]   ;;  %s2452_s1 = inlined_call_operand.vmem [shape: f32[14,256], index: 1, kind: input, shape index: {}]   ;;  %s2453_s2 = inlined_call_operand.vmem [shape: f32[7,256], index: 2, kind: input, shape index: {}]   ;;  %s2454_s3 = inlined_call_operand.hbm [shape: f32[2,32,256], index: 3, kind: input, shape index: {}]   ;;  %s2455_s4 = inlined_call_operand.vmem [shape: f32[32,2], index: 4, kind: input, shape index: {}]   ;;  %s2456_s5 = inlined_call_operand.vmem [shape: f32[1,2], index: 5, kind: input, shape index: {}]   ;;  %s2457_s6 = inlined_call_operand.vmem [shape: f32[2,32], index: 6, kind: input, shape index: {}]   ;;  %s2458_s7 = inlined_call_operand.vmem [shape: f32[1,32], index: 7, kind: input, shape index: {}]   ;;  %s2459_s8 = inlined_call_operand.hbm [shape: f32[2,32,256], index: 8, kind: output, shape index: {}]  }
   0x1   :  { %14 = vsyncpa [#allocation4], 0  ;;  %s25_s29 = sshll.u32 %s2454_s3, 4  ;;  %s1493_s30 = smov [#allocation2]   ;;  %s26_s29 = int_to_ptr.hbm [resolvable:$true] %s25_s29 }
   0x2   :  { %s27_s9 = sshll.u32 %s1493_s30, 4  ;;  %s1494_s10 = smov 256   ;;  %s28_s9 = int_to_ptr.vmem [resolvable:$true] %s27_s9 }
   0x3   :  { %s1495_s11 = smov 16  }
   0x4   :  { %33 = dma.hbm_to_vmem [thread:$0]  %s26_s29, 2048, %s28_s9, [#allocation3], %s1494_s10, %s1494_s10, %s1495_s11  }
   0x5   :  { %1489 = dma.done.wait [#allocation3], 2048  }
   0x6   :  { %1490 = vsyncadd [#allocation3], 4294965248  ;;  %v1568_v0 = vld [vmem:[#allocation2 + $0x40] sm:$0xff]  ;;  %v1570_v1 = vld [vmem:[#allocation2 + $0x48] sm:$0xff]  ;;  %v1496_v33 = vmov 256.0   ;;  %v141_v44 = vlaneseq  ;;  %vm146_vm1 = vcmask 130112  }
   0x7   :  { %v1572_v2 = vld [vmem:[#allocation2] sm:$0xff]  ;;  %v74_v3 = vadd.f32 %v1570_v1, %v1568_v0  ;;  %v1576_v4 = vld [vmem:[#allocation2 + $0x8] sm:$0xff]  ;;  %v1586_v9 = vld [vmem:[#allocation2 + $0x50] sm:$0xff]  ;;  %v113_v25 = vmax.f32 %v1568_v0, %v1570_v1  ;;  %1417 = vrcp.f32 %v1496_v33  ;;  %vm150_vm2 = vcmask 195712   ;;  %s1506_s25 = smov 32   ;;  %s1507_s26 = smov 112  }
   0x8   :  { %v1578_v5 = vld [vmem:[#allocation2 + $0x20] sm:$0xff]  ;;  %v1580_v6 = vld [vmem:[#allocation2 + $0x28] sm:$0xff]  ;;  %v62_v7 = vadd.f32 %v1576_v4, %v1572_v2  ;;  %v1588_v10 = vld [vmem:[#allocation2 + $0x58] sm:$0xff]  ;;  %v101_v24 = vmax.f32 %v1572_v2, %v1576_v4  ;;  %v1645_v46 = vand.u32 127, %v141_v44  ;;  %vm154_vm3 = vcmask 261312   ;;  %s1508_s27 = smov 96  }
   0x9   :  { %v68_v8 = vadd.f32 %v1580_v6, %v1578_v5  ;;  %75 = vadd.xlane.f32.xlu1 %v74_v3  ;;  %v1590_v11 = vld [vmem:[#allocation2 + $0x10] sm:$0xff]  ;;  %v1592_v12 = vld [vmem:[#allocation2 + $0x18] sm:$0xff]  ;;  %v1594_v13 = vld [vmem:[#allocation2 + $0x60] sm:$0xff]  ;;  %v77_v15 = vadd.f32 %v1588_v10, %v1586_v9  ;;  %v116_v27 = vmax.f32 %v1586_v9, %v1588_v10  ;;  %v107_v29 = vmax.f32 %v1578_v5, %v1580_v6  ;;  %s1509_s28 = smov 80   ;;  %s1510_s12 = smov 3  }
   0xa   :  { %63 = vadd.xlane.f32.xlu0 %v62_v7  ;;  %v1596_v14 = vld [vmem:[#allocation2 + $0x68] sm:$0xff]  ;;  %v65_v16 = vadd.f32 %v1592_v12, %v1590_v11  ;;  %v1604_v18 = vld [vmem:[#allocation2 + $0x70] sm:$0xff]  ;;  %v1606_v19 = vld [vmem:[#allocation2 + $0x78] sm:$0xff]  ;;  %v104_v26 = vmax.f32 %v1590_v11, %v1592_v12  ;;  %v144_v50 = vadd.s32 4294967288, %v1645_v46  ;;  %v148_v56 = vadd.s32 4294967280, %v1645_v46  ;;  %s1511_s13 = smov 2  }
   0xb   :  { %69 = vadd.xlane.f32.xlu2 %v68_v8  ;;  %v80_v17 = vadd.f32 %v1596_v14, %v1594_v13  ;;  %v1608_v20 = vld [vmem:[#allocation2 + $0x30] sm:$0xff]  ;;  %v1610_v21 = vld [vmem:[#allocation2 + $0x38] sm:$0xff]  ;;  %v83_v22 = vadd.f32 %v1606_v19, %v1604_v18  ;;  %v119_v28 = vmax.f32 %v1594_v13, %v1596_v14  ;;  %v122_v31 = vmax.f32 %v1604_v18, %v1606_v19  ;;  %v126_v35 = vld [vmem:[%s2455_s4 + $0x8] sm:$0xff]  ;;  %s1512_s14 = smov 1   ;;  %s1513_s15 = smov 127  }
   0xc   :  { %v71_v23 = vadd.f32 %v1610_v21, %v1608_v20  ;;  %v110_v30 = vmax.f32 %v1608_v20, %v1610_v21  ;;  %v128_v32 = vld [vmem:[%s2455_s4 + $0x18] sm:$0xff]  ;;  %v127_v34 = vld [vmem:[%s2455_s4 + $0x10] sm:$0xff]  ;;  %v125_v36 = vld [vmem:[%s2455_s4] sm:$0xff]  ;;  %v152_v62 = vadd.s32 4294967272, %v1645_v46  ;;  %vm163_vm4 = vcmask 1041409   ;;  %s1514_s16 = smov 126  }
   0xd   :  { %180 = vmatpush.msra.mxu0 %v128_v32  ;;  %226 = vmatpush.msra.mxu1 %v128_v32  ;;  %v1418_v37 = vpop.eup %1417  ;;  %vm165_vm5 = vcmask 261120   ;;  %vm246_vm6 = vcmask 1041408   ;;  %vm242_vm7 = vcmask 15360   ;;  %vm408_vm13 = vcmask 1040384   ;;  %s1515_s17 = smov 125  }
   0xe   :  { %v87_v38 = vmul.f32 256.0, %v1418_v37  ;;  %vm91_vm0 = vweird.f32 %v1418_v37  ;;  %vm415_vm14 = vcmp.lt.s32.totalorder %v1645_v46, 48  ;;  %vm429_vm15 = vcmp.lt.s32.totalorder %v1645_v46, 16 }
   0xf   :  { %181 = vmatpush.msra.mxu0 %v127_v34  ;;  %227 = vmatpush.msra.mxu1 %v127_v34 }
  0x10   :  { %v88_v39 = vsub.f32 1.0, %v87_v38 }
  0x11   :  { %78 = vadd.xlane.f32.xlu1 %v77_v15  ;;  %182 = vmatpush.msra.mxu0 %v126_v35 }
  0x12   :  { %66 = vadd.xlane.f32.xlu0 %v65_v16  ;;  %228 = vmatpush.msra.mxu1 %v126_v35  ;;  %v89_v40 = vmul.f32 %v1418_v37, %v88_v39 }
  0x13   :  { %81 = vadd.xlane.f32.xlu2 %v80_v17  ;;  %183 = vmatpush.msra.mxu0 %v125_v36 }
  0x14   :  { %229 = vmatpush.msra.mxu1 %v125_v36  ;;  %v90_v45 = vadd.f32 %v1418_v37, %v89_v40 }
  0x16   :  { %v92_v47 = vsel %vm91_vm0, %v1418_v37, %v90_v45  ;;  %vm422_vm0 = vcmp.lt.s32.totalorder %v1645_v46, 32 }
  0x19   :  { %84 = vadd.xlane.f32.xlu1 %v83_v22 }
  0x1a   :  { %72 = vadd.xlane.f32.xlu0 %v71_v23 }
  0x1b   :  { %102 = vmax.xlane.f32.xlu2 %v101_v24 }
  0x21   :  { %114 = vmax.xlane.f32.xlu1 %v113_v25 }
  0x22   :  { %105 = vmax.xlane.f32.xlu0 %v104_v26 }
  0x23   :  { %117 = vmax.xlane.f32.xlu2 %v116_v27 }
  0x29   :  { %120 = vmax.xlane.f32.xlu1 %v119_v28 }
  0x2a   :  { %108 = vmax.xlane.f32.xlu0 %v107_v29 }
  0x2b   :  { %111 = vmax.xlane.f32.xlu2 %v110_v30 }
  0x32   :  { %123 = vmax.xlane.f32.xlu0 %v122_v31 }
  0x7c   :  { %v76_v41 = vpop.xlane.xlu1 %75 }
  0x7d   :  { %v64_v42 = vpop.xlane.xlu0 %63  ;;  %v97_v49 = vmul.f32 %v92_v47, %v76_v41 }
  0x7e   :  { %v70_v43 = vpop.xlane.xlu2 %69  ;;  %v93_v55 = vmul.f32 %v92_v47, %v64_v42 }
  0x7f   :  { %v156_v58 = vperm.slane %v97_v49, %v1645_v46  ;;  %v95_v59 = vmul.f32 %v92_v47, %v70_v43 }
  0x80   :  { %v143_v63 = vperm.slane %v93_v55, %v1645_v46 }
  0x81   :  { %v149_v8 = vperm.slane %v95_v59, %v148_v56  ;;  %v1498_v59 = vmov 1  }
  0x82   :  { %1399 = vset.pattern.permute.xlu1 %v1498_v59 }
  0x84   :  { %v79_v48 = vpop.xlane.xlu1 %78 }
  0x85   :  { %v98_v51 = vmul.f32 %v92_v47, %v79_v48  ;;  %v67_v52 = vpop.xlane.xlu0 %66 }
  0x86   :  { %v82_v53 = vpop.xlane.xlu2 %81  ;;  %v94_v54 = vmul.f32 %v92_v47, %v67_v52 }
  0x87   :  { %v99_v57 = vmul.f32 %v92_v47, %v82_v53  ;;  %v157_v60 = vperm.slane %v98_v51, %v144_v50 }
  0x88   :  { %v145_v61 = vperm.slane %v94_v54, %v144_v50 }
  0x89   :  { %v159_v3 = vperm.slane %v99_v57, %v148_v56  ;;  %v158_v15 = vsel %vm146_vm1, %v157_v60, %v156_v58  ;;  %v356_v57 = vld [vmem:[%s2451_s0 + $0x8] sm:$0x3f]  ;;  %v1497_v58 = vmov 0   ;;  %v355_v60 = vld [vmem:[%s2451_s0] sm:$0xff] }
  0x8a   :  { %v147_v23 = vsel %vm146_vm1, %v145_v61, %v143_v63  ;;  %1397 = vset.pattern.permute.xlu2 %v1497_v58  ;;  %562 = vperm.xlu1 %1399, %v356_v57   ;;  %v1499_v61 = vmov 2   ;;  %v1501_v63 = vmov 4  }
  0x8b   :  { %v160_v27 = vsel %vm150_vm2, %v159_v3, %v158_v15  ;;  %v151_v28 = vsel %vm150_vm2, %v149_v8, %v147_v23  ;;  %519 = vperm.xlu2 %1397, %v356_v57   ;;  %1396 = vset.pattern.permute.xlu0 %v1497_v58  ;;  %v1416_v3 = vld [vmem:[%s2456_s5] ss:$0 sm:$0xff]  ;;  %s1350_s5 = sshll.u32 %s2459_s8, 4  ;;  %s1351_s5 = int_to_ptr.hbm [resolvable:$true] %s1350_s5 }
  0x8c   :  { %v85_v7 = vpop.xlane.xlu1 %84  ;;  %514 = vperm.xlu0 %1396, %v355_v60  }
  0x8d   :  { %v100_v16 = vmul.f32 %v92_v47, %v85_v7  ;;  %v73_v17 = vpop.xlane.xlu0 %72 }
  0x8e   :  { %v103_v22 = vpop.xlane.xlu2 %102  ;;  %v96_v24 = vmul.f32 %v92_v47, %v73_v17 }
  0x8f   :  { %v161_v25 = vperm.slane %v100_v16, %v152_v62  ;;  %v197_v36 = vperm.slane %v103_v22, %v1645_v46 }
  0x90   :  { %v153_v26 = vperm.slane %v96_v24, %v152_v62  ;;  %v1502_v24 = vmov 5  }
  0x91   :  { %v162_v29 = vsel %vm154_vm3, %v161_v25, %v160_v27  ;;  %v1503_v25 = vmov 6   ;;  %v237_v27 = vld [vmem:[%s2458_s7] sm:$0x1]  ;;  %s1505_s7 = smov 48  }
  0x92   :  { %v155_v30 = vsel %vm154_vm3, %v153_v26, %v151_v28  ;;  %1401 = vset.pattern.permute.xlu1 %v1499_v61  ;;  %v291_v26 = vshrl.u32 %v141_v44, 7 }
  0x93   :  { %v164_v31 = vsel %vm163_vm4, %v162_v29, %v155_v30  ;;  %1398 = vset.pattern.permute.xlu2 %v1498_v59  ;;  %605 = vperm.xlu1 %1401, %v356_v57   ;;  %v238_v30 = vmul.f32 2.0, %v237_v27 }
  0x94   :  { %1363 = vmatmul.msk.f32.vlgmr.msra.gmra.mxu0 %vm165_vm5, %v164_v31  ;;  %v115_v33 = vpop.xlane.xlu1 %114  ;;  %558 = vperm.xlu2 %1398, %v355_v60   ;;  %v298_v28 = vadd.s32 8, %v291_v26  ;;  %v304_v29 = vadd.s32 16, %v291_v26 }
  0x95   :  { %v106_v32 = vpop.xlane.xlu0 %105  ;;  %v204_v37 = vperm.slane %v115_v33, %v1645_v46  ;;  %v240_v31 = vperm.slane %v238_v30, 0 }
  0x96   :  { %v118_v34 = vpop.xlane.xlu2 %117  ;;  %v198_v38 = vperm.slane %v106_v32, %v144_v50 }
  0x97   :  { %v205_v39 = vperm.slane %v118_v34, %v144_v50 }
  0x98   :  { %v199_v45 = vsel %vm146_vm1, %v198_v38, %v197_v36 }
  0x99   :  { %v206_v47 = vsel %vm146_vm1, %v205_v39, %v204_v37  ;;  %vm485_vm1 = vcmask 1043456  }
  0x9b   :  { %1405 = vset.pattern.permute.xlu1 %v1501_v63 }
  0x9c   :  { %v121_v40 = vpop.xlane.xlu1 %120  ;;  %1400 = vset.pattern.permute.xlu2 %v1499_v61  ;;  %678 = vperm.xlu1 %1405, %v356_v57  }
  0x9d   :  { %v109_v35 = vpop.xlane.xlu0 %108  ;;  %v207_v43 = vperm.slane %v121_v40, %v148_v56  ;;  %601 = vperm.xlu2 %1400, %v355_v60  }
  0x9e   :  { %v200_v41 = vperm.slane %v109_v35, %v148_v56  ;;  %v112_v42 = vpop.xlane.xlu2 %111  ;;  %v236_v56 = vld [vmem:[%s2457_s6] sm:$0x3] }
  0x9f   :  { %v202_v48 = vperm.slane %v112_v42, %v152_v62  ;;  %v208_v53 = vsel %vm150_vm2, %v207_v43, %v206_v47  ;;  %1365 = vmatpush.msk.msra.mxu2 %vm246_vm6, %v236_v56 }
  0xa0   :  { %v201_v49 = vsel %vm150_vm2, %v200_v41, %v199_v45  ;;  %vm488_vm2 = vcmask 1045504  }
  0xa1   :  { %v203_v54 = vsel %vm154_vm3, %v202_v48, %v201_v49  ;;  %v310_v49 = vadd.s32 24, %v291_v26 }
  0xa4   :  { %1408 = vset.pattern.permute.xlu1 %v291_v26 }
  0xa5   :  { %v124_v51 = vpop.xlane.xlu0 %123 }
  0xa6   :  { %v209_v52 = vperm.slane %v124_v51, %v152_v62  ;;  %v1500_v62 = vmov 3  }
  0xa7   :  { %1402 = vset.pattern.permute.xlu0 %v1500_v62  ;;  %1403 = vset.pattern.permute.xlu2 %v1500_v62 }
  0xa8   :  { %v210_v55 = vsel %vm154_vm3, %v209_v52, %v208_v53  ;;  %631 = vperm.xlu0 %1402, %v355_v60   ;;  %635 = vperm.xlu2 %1403, %v356_v57   ;;  %vm450_vm3 = vcmp.lt.s32.totalorder %v1645_v46, 80 }
  0xa9   :  { %v211_v50 = vsel %vm163_vm4, %v210_v55, %v203_v54  ;;  %vm443_vm4 = vcmp.lt.s32.totalorder %v1645_v46, 96 }
  0xaa   :  { %1364 = vmatmul.msk.f32.vlgmr.msra.gmra.mxu1 %vm165_vm5, %v211_v50  ;;  %vm436_vm5 = vcmp.lt.s32.totalorder %v1645_v46, 112 }
  0xb0   :  { %1404 = vset.pattern.permute.xlu2 %v1501_v63  ;;  %1410 = vset.pattern.permute.xlu0 %v304_v29 }
  0xb1   :  { %674 = vperm.xlu2 %1404, %v355_v60  }
  0xb9   :  { %1406 = vset.pattern.permute.xlu2 %v1502_v24 }
  0xba   :  { %717 = vperm.xlu2 %1406, %v355_v60  }
  0xc2   :  { %721 = vperm.xlu2 %1406, %v356_v57  }
  0xca   :  { %1407 = vset.pattern.permute.xlu2 %v1503_v25 }
  0xcb   :  { %764 = vperm.xlu2 %1407, %v356_v57  }
  0xd3   :  { %760 = vperm.xlu2 %1407, %v355_v60  }
  0xdb   :  { %1409 = vset.pattern.permute.xlu2 %v298_v28 }
  0xe5   :  { %v1687_v52 = vpop.permute.xlu2 %519 }
  0xee   :  { %v1689_v53 = vpop.permute.xlu2 %558 }
  0xf7   :  { %v1691_v54 = vpop.permute.xlu2 %601 }
  0xfc   :  { %v1703_v59 = vpop.permute.xlu1 %562 }
  0xfe   :  { %v1707_v61 = vpop.permute.xlu0 %514 }
  0xff   :  { %2478 = vst [vmem:[#allocation8_spill] sm:$0xff] %v1707_v61 }
 0x102   :  { %v1693_v55 = vpop.permute.xlu2 %635 }
 0x105   :  { %v1709_v62 = vpop.permute.xlu1 %605 }
 0x10b   :  { %v1695_v50 = vpop.permute.xlu2 %674 }
 0x111   :  { %v185_v7 = vpop.f32.mrf.mxu0 }
 0x112   :  { %v186_v8 = vadd.f32 %v1416_v3, %v185_v7  ;;  %v1713_v7 = vpop.permute.xlu1 %678 }
 0x114   :  { %v188_v17 = vmax.f32 %v186_v8, 0.0  ;;  %v1697_v56 = vpop.permute.xlu2 %717  ;;  %v1504_v8 = vmov 32.0  }
 0x11c   :  { %v1699_v57 = vpop.permute.xlu2 %721 }
 0x125   :  { %v1701_v58 = vpop.permute.xlu2 %764 }
 0x127   :  { %v231_v15 = vpop.f32.mrf.mxu1 }
 0x128   :  { %v232_v16 = vadd.f32 %v1416_v3, %v231_v15  ;;  %v1711_v3 = vpop.permute.xlu0 %631 }
 0x12a   :  { %v234_v22 = vmax.f32 %v232_v16, 0.0 }
 0x12c   :  { %v235_v23 = vadd.f32 %v234_v22, %v188_v17 }
 0x12d   :  { %v1705_v60 = vpop.permute.xlu2 %760 }
 0x12e   :  { %1366 = vmatmul.msk.f32.vlgmr.msra.gmra.mxu2 %vm242_vm7, %v235_v23  ;;  %vm711_vm7 = vcmp.lt.s32.totalorder %v1645_v46, 126 }
 0x1b1   :  { %v267_v32 = vpop.f32.mrf.mxu2 }
 0x1b2   :  { %v268_v33 = vadd.f32 %v267_v32, %v240_v31 }
 0x1b4   :  { %v1367_v34 = vmul.f32 -1.442695, %v268_v33 }
 0x1b6   :  { %1419 = vpow2.f32 %v1367_v34 }
 0x1bc   :  { %v1420_v35 = vpop.eup %1419 }
 0x1bd   :  { %v273_v36 = vadd.f32 1.0, %v1420_v35 }
 0x1bf   :  { %1421 = vrcp.f32 %v273_v36  ;;  %v285_v39 = vand.u32 2147483648, %v273_v36  ;;  %v283_v41 = vand.u32 2147483647, %v273_v36  ;;  %vm279_vm9 = vweird.f32 %v273_v36 }
 0x1c0   :  { %1423 = vrcp.f32 %v1504_v8 }
 0x1c1   :  { %v286_v43 = vor.u32 1.1754944e-38, %v285_v39  ;;  %vm284_vm11 = vcmp.eq.f32.partialorder %v283_v41, 8.507059e+37 }
 0x1c5   :  { %v1422_v37 = vpop.eup %1421 }
 0x1c6   :  { %v275_v44 = vmul.f32 %v1422_v37, %v273_v36  ;;  %vm280_vm8 = vweird.f32 %v1422_v37  ;;  %v1424_v22 = vpop.eup %1423 }
 0x1c7   :  { %vm281_vm10 = vmor %vm279_vm9, %vm280_vm8  ;;  %vm404_vm12 = vweird.f32 %v1424_v22  ;;  %vm595_vm8 = vcmp.lt.s32.totalorder %v1645_v46, 1  ;;  %vm552_vm9 = vcmp.lt.s32.totalorder %v1645_v46, 2 }
 0x1c8   :  { %v276_v38 = vsub.f32 1.0, %v275_v44 }
 0x1ca   :  { %v277_v40 = vmul.f32 %v1422_v37, %v276_v38 }
 0x1cc   :  { %v278_v42 = vadd.f32 %v1422_v37, %v277_v40 }
 0x1ce   :  { %v282_v45 = vsel %vm281_vm10, %v1422_v37, %v278_v42  ;;  %vm668_vm10 = vcmp.lt.s32.totalorder %v1645_v46, 127 }
 0x1cf   :  { %v287_v47 = vsel %vm284_vm11, %v286_v43, %v282_v45  ;;  %vm754_vm11 = vcmp.lt.s32.totalorder %v1645_v46, 125 }
 0x1d0   :  { %v289_v48 = vperm.slane %v287_v47, 0  ;;  %v314_v51 = vperm.slane %v287_v47, 1 }
 0x1d2   :  { %306 = vperm.xlu0 %1410, %v289_v48   ;;  %300 = vperm.xlu2 %1409, %v289_v48  }
 0x1d3   :  { %294 = vperm.xlu1 %1408, %v289_v48  }
 0x1da   :  { %1411 = vset.pattern.permute.xlu2 %v310_v49  ;;  %1415 = vset.pattern.permute.xlu0 %v1503_v25 }
 0x1db   :  { %319 = vperm.xlu1 %1408, %v314_v51  }
 0x1e2   :  { %312 = vperm.xlu2 %1411, %v289_v48  }
 0x1e3   :  { %1413 = vset.pattern.permute.xlu1 %v304_v29  ;;  %v400_v29 = vmul.f32 32.0, %v1424_v22 }
 0x1e5   :  { %v401_v34 = vsub.f32 1.0, %v400_v29 }
 0x1e7   :  { %v402_v42 = vmul.f32 %v1424_v22, %v401_v34 }
 0x1ea   :  { %1412 = vset.pattern.permute.xlu2 %v298_v28 }
 0x1eb   :  { %331 = vperm.xlu1 %1413, %v314_v51  }
 0x1f2   :  { %325 = vperm.xlu2 %1412, %v314_v51  }
 0x1fa   :  { %1414 = vset.pattern.permute.xlu2 %v310_v49 }
 0x202   :  { %337 = vperm.xlu2 %1414, %v314_v51  }
 0x22c   :  { %v301_v63 = vpop.permute.xlu2 %300 }
 0x22d   :  { %v1722_v24 = vmul.f32 %v301_v63, %v1590_v11  ;;  %v1725_v25 = vmul.f32 %v301_v63, %v1592_v12 }
 0x22f   :  { %2481 = vst [vmem:[#allocation11_spill] sm:$0xff] %v1722_v24 }
 0x230   :  { %2482 = vst [vmem:[#allocation12_spill] sm:$0xff] %v1725_v25 }
 0x23c   :  { %v313_v15 = vpop.permute.xlu2 %312 }
 0x23d   :  { %v1716_v16 = vmul.f32 %v313_v15, %v1608_v20  ;;  %v1719_v17 = vmul.f32 %v313_v15, %v1610_v21  ;;  %v403_v15 = vadd.f32 %v1424_v22, %v402_v42 }
 0x23f   :  { %2479 = vst [vmem:[#allocation9_spill] sm:$0xff] %v1716_v16  ;;  %v364_v11 = vmax.f32 %v1722_v24, %v1716_v16  ;;  %v373_v12 = vmax.f32 %v1725_v25, %v1719_v17 }
 0x240   :  { %2480 = vst [vmem:[#allocation10_spill] sm:$0xff] %v1719_v17 }
 0x244   :  { %v307_v23 = vpop.permute.xlu0 %306 }
 0x245   :  { %v295_v26 = vpop.permute.xlu1 %294  ;;  %v1728_v27 = vmul.f32 %v307_v23, %v1578_v5  ;;  %v1731_v28 = vmul.f32 %v307_v23, %v1580_v6 }
 0x246   :  { %v1734_v20 = vmul.f32 %v295_v26, %v1572_v2  ;;  %v1737_v21 = vmul.f32 %v295_v26, %v1576_v4 }
 0x247   :  { %2483 = vst [vmem:[#allocation13_spill] sm:$0xff] %v1728_v27 }
 0x248   :  { %2484 = vst [vmem:[#allocation14_spill] sm:$0xff] %v1731_v28  ;;  %v381_v5 = vadd.f32 %v1722_v24, %v1734_v20  ;;  %v390_v6 = vadd.f32 %v1725_v25, %v1737_v21  ;;  %v363_v2 = vmax.f32 %v1734_v20, %v1728_v27  ;;  %v372_v4 = vmax.f32 %v1737_v21, %v1731_v28 }
 0x249   :  { %2485 = vst [vmem:[#allocation15_spill] sm:$0xff] %v1734_v20 }
 0x24a   :  { %2486 = vst [vmem:[#allocation16_spill] sm:$0xff] %v1737_v21  ;;  %v365_v30 = vmax.f32 %v363_v2, %v364_v11  ;;  %v374_v31 = vmax.f32 %v372_v4, %v373_v12  ;;  %v382_v32 = vadd.f32 %v381_v5, %v1728_v27  ;;  %v391_v33 = vadd.f32 %v390_v6, %v1731_v28 }
 0x24b   :  { %v1755_v4 = vsel %vm404_vm12, %v1424_v22, %v403_v15 }
 0x24c   :  { %v366_v35 = vrot.slane %v365_v30, 4  ;;  %v375_v36 = vrot.slane %v374_v31, 4  ;;  %v383_v37 = vadd.f32 %v382_v32, %v1716_v16  ;;  %v392_v44 = vadd.f32 %v391_v33, %v1719_v17  ;;  %v326_v11 = vpop.permute.xlu2 %325 }
 0x24d   :  { %v320_v12 = vpop.permute.xlu1 %319  ;;  %v1758_v32 = vmul.f32 %v326_v11, %v1586_v9  ;;  %v1761_v33 = vmul.f32 %v326_v11, %v1588_v10 }
 0x24e   :  { %v367_v38 = vmax.f32 %v365_v30, %v366_v35  ;;  %v376_v39 = vmax.f32 %v374_v31, %v375_v36  ;;  %v384_v40 = vrot.slane %v383_v37, 4  ;;  %v393_v41 = vrot.slane %v392_v44, 4 }
 0x24f   :  { %2487 = vst [vmem:[#allocation17_spill] sm:$0xff] %v1758_v32  ;;  %v1764_v34 = vmul.f32 %v320_v12, %v1568_v0  ;;  %v1767_v35 = vmul.f32 %v320_v12, %v1570_v1 }
 0x250   :  { %v368_v43 = vrot.slane %v367_v38, 2  ;;  %v377_v45 = vrot.slane %v376_v39, 2  ;;  %v385_v47 = vadd.f32 %v384_v40, %v383_v37  ;;  %v394_v48 = vadd.f32 %v393_v41, %v392_v44  ;;  %2488 = vst [vmem:[#allocation18_spill] sm:$0xff] %v1761_v33 }
 0x251   :  { %2489 = vst [vmem:[#allocation19_spill] sm:$0xff] %v1764_v34  ;;  %v911_v40 = vadd.f32 %v1758_v32, %v1764_v34  ;;  %v920_v41 = vadd.f32 %v1761_v33, %v1767_v35 }
 0x252   :  { %v369_v49 = vmax.f32 %v367_v38, %v368_v43  ;;  %v378_v51 = vmax.f32 %v376_v39, %v377_v45  ;;  %v386_v63 = vrot.slane %v385_v47, 2  ;;  %v395_v8 = vrot.slane %v394_v48, 2  ;;  %2490 = vst [vmem:[#allocation20_spill] sm:$0xff] %v1767_v35 }
 0x254   :  { %v387_v23 = vadd.f32 %v386_v63, %v385_v47  ;;  %v396_v26 = vadd.f32 %v395_v8, %v394_v48  ;;  %v370_v29 = vrot.slane %v369_v49, 1  ;;  %v379_v5 = vrot.slane %v378_v51, 1 }
 0x256   :  { %v388_v6 = vrot.slane %v387_v23, 1  ;;  %v397_v2 = vrot.slane %v396_v26, 1  ;;  %v371_v36 = vmax.f32 %v369_v49, %v370_v29  ;;  %v380_v37 = vmax.f32 %v378_v51, %v379_v5 }
 0x258   :  { %v389_v30 = vadd.f32 %v388_v6, %v387_v23  ;;  %v398_v31 = vadd.f32 %v397_v2, %v396_v26 }
 0x25a   :  { %v407_v22 = vmul.f32 %v1755_v4, %v398_v31  ;;  %v406_v44 = vmul.f32 %v1755_v4, %v389_v30 }
 0x25c   :  { %v338_v38 = vpop.permute.xlu2 %337  ;;  %v1772_v39 = vsel %vm408_vm13, %v380_v37, %v407_v22  ;;  %v1775_v9 = vsel %vm408_vm13, %v371_v36, %v406_v44 }
 0x25d   :  { %v1778_v10 = vmul.f32 %v338_v38, %v1604_v18  ;;  %v1781_v0 = vmul.f32 %v338_v38, %v1606_v19  ;;  %v332_v1 = vpop.permute.xlu1 %331  ;;  %413 = vrot.lane.b32.xlu0 %v1772_v39, %s1505_s7  ;;  %418 = vrot.lane.b32.xlu2 %v1775_v9, %s1506_s25 }
 0x25e   :  { %v1792_v18 = vmul.f32 %v332_v1, %v1594_v13  ;;  %v1795_v19 = vmul.f32 %v332_v1, %v1596_v14  ;;  %411 = vrot.lane.b32.xlu1 %v1775_v9, %s1505_s7 }
 0x25f   :  { %2491 = vst [vmem:[#allocation21_spill] sm:$0xff] %v1778_v10  ;;  %v894_v42 = vmax.f32 %v1758_v32, %v1778_v10  ;;  %v903_v43 = vmax.f32 %v1761_v33, %v1781_v0 }
 0x260   :  { %2492 = vst [vmem:[#allocation22_spill] sm:$0xff] %v1781_v0  ;;  %v893_v45 = vmax.f32 %v1764_v34, %v1792_v18  ;;  %v902_v47 = vmax.f32 %v1767_v35, %v1795_v19  ;;  %v912_v13 = vadd.f32 %v911_v40, %v1792_v18  ;;  %v921_v14 = vadd.f32 %v920_v41, %v1795_v19 }
 0x261   :  { %2493 = vst [vmem:[#allocation23_spill] sm:$0xff] %v1792_v18 }
 0x262   :  { %2494 = vst [vmem:[#allocation24_spill] sm:$0xff] %v1795_v19  ;;  %v895_v48 = vmax.f32 %v893_v45, %v894_v42  ;;  %v904_v49 = vmax.f32 %v902_v47, %v903_v43  ;;  %v913_v51 = vadd.f32 %v912_v13, %v1778_v10  ;;  %v922_v63 = vadd.f32 %v921_v14, %v1781_v0 }
 0x264   :  { %v914_v8 = vrot.slane %v913_v51, 4  ;;  %v923_v15 = vrot.slane %v922_v63, 4  ;;  %v896_v23 = vrot.slane %v895_v48, 4  ;;  %v905_v26 = vrot.slane %v904_v49, 4 }
 0x265   :  { %425 = vrot.lane.b32.xlu0 %v1775_v9, %s1495_s11  ;;  %427 = vrot.lane.b32.xlu2 %v1772_v39, %s1495_s11 }
 0x266   :  { %v915_v11 = vadd.f32 %v914_v8, %v913_v51  ;;  %v924_v12 = vadd.f32 %v923_v15, %v922_v63  ;;  %420 = vrot.lane.b32.xlu1 %v1772_v39, %s1506_s25  ;;  %v897_v6 = vmax.f32 %v895_v48, %v896_v23  ;;  %v906_v2 = vmax.f32 %v904_v49, %v905_v26 }
 0x268   :  { %v916_v29 = vrot.slane %v915_v11, 2  ;;  %v925_v5 = vrot.slane %v924_v12, 2  ;;  %v898_v36 = vrot.slane %v897_v6, 2  ;;  %v907_v37 = vrot.slane %v906_v2, 2 }
 0x26a   :  { %v917_v30 = vadd.f32 %v916_v29, %v915_v11  ;;  %v926_v31 = vadd.f32 %v925_v5, %v924_v12  ;;  %v899_v38 = vmax.f32 %v897_v6, %v898_v36  ;;  %v908_v1 = vmax.f32 %v906_v2, %v907_v37 }
 0x26c   :  { %v918_v22 = vrot.slane %v917_v30, 1  ;;  %v927_v44 = vrot.slane %v926_v31, 1  ;;  %v900_v42 = vrot.slane %v899_v38, 1  ;;  %v909_v43 = vrot.slane %v908_v1, 1 }
 0x26d   :  { %434 = vrot.lane.b32.xlu0 %v1772_v39, %s1507_s26  ;;  %439 = vrot.lane.b32.xlu2 %v1775_v9, %s1508_s27 }
 0x26e   :  { %432 = vrot.lane.b32.xlu1 %v1775_v9, %s1507_s26  ;;  %v919_v40 = vadd.f32 %v918_v22, %v917_v30  ;;  %v928_v41 = vadd.f32 %v927_v44, %v926_v31  ;;  %v901_v13 = vmax.f32 %v899_v38, %v900_v42  ;;  %v910_v14 = vmax.f32 %v908_v1, %v909_v43 }
 0x26f   :  { %v468_v22 = vrot.slane %v1772_v39, 2  ;;  %v467_v44 = vrot.slane %v1775_v9, 2 }
 0x270   :  { %v929_v45 = vmul.f32 %v919_v40, %v1755_v4  ;;  %v930_v47 = vmul.f32 %v928_v41, %v1755_v4 }
 0x272   :  { %v1828_v48 = vsel %vm408_vm13, %v901_v13, %v929_v45  ;;  %v1831_v49 = vsel %vm408_vm13, %v910_v14, %v930_v47 }
 0x275   :  { %446 = vrot.lane.b32.xlu0 %v1775_v9, %s1509_s28  ;;  %448 = vrot.lane.b32.xlu2 %v1772_v39, %s1509_s28 }
 0x276   :  { %441 = vrot.lane.b32.xlu1 %v1772_v39, %s1508_s27 }
 0x27d   :  { %939 = vrot.lane.b32.xlu0 %v1828_v48, %s1506_s25  ;;  %941 = vrot.lane.b32.xlu2 %v1831_v49, %s1506_s25 }
 0x27e   :  { %957 = vrot.lane.b32.xlu1 %v1828_v48, %s1508_s27 }
 0x285   :  { %959 = vrot.lane.b32.xlu0 %v1831_v49, %s1508_s27  ;;  %945 = vrot.lane.b32.xlu2 %v1828_v48, %s1495_s11 }
 0x286   :  { %947 = vrot.lane.b32.xlu1 %v1831_v49, %s1495_s11 }
 0x28d   :  { %963 = vrot.lane.b32.xlu0 %v1828_v48, %s1509_s28  ;;  %965 = vrot.lane.b32.xlu2 %v1831_v49, %s1509_s28 }
 0x28e   :  { %933 = vrot.lane.b32.xlu1 %v1828_v48, %s1505_s7 }
 0x295   :  { %935 = vrot.lane.b32.xlu0 %v1831_v49, %s1505_s7  ;;  %951 = vrot.lane.b32.xlu2 %v1828_v48, %s1507_s26 }
 0x296   :  { %953 = vrot.lane.b32.xlu1 %v1831_v49, %s1507_s26 }
 0x2b7   :  { %v419_v4 = vpop.permute.xlu2 %418 }
 0x2bf   :  { %v428_v51 = vpop.permute.xlu2 %427 }
 0x2c7   :  { %v440_v26 = vpop.permute.xlu2 %439 }
 0x2cf   :  { %v414_v63 = vpop.permute.xlu0 %413  ;;  %v449_v47 = vpop.permute.xlu2 %448 }
 0x2d0   :  { %v412_v8 = vpop.permute.xlu1 %411 }
 0x2d1   :  { %v416_v15 = vsel %vm415_vm14, %v412_v8, %v414_v63  ;;  %v417_v23 = vsel %vm415_vm14, %v414_v63, %v412_v8 }
 0x2d7   :  { %v426_v11 = vpop.permute.xlu0 %425 }
 0x2d8   :  { %v430_v12 = vsel %vm429_vm15, %v426_v11, %v428_v51  ;;  %v431_v29 = vsel %vm429_vm15, %v428_v51, %v426_v11  ;;  %v421_v5 = vpop.permute.xlu1 %420 }
 0x2d9   :  { %v461_v6 = vrot.slane %v431_v29, 4  ;;  %v462_v2 = vrot.slane %v430_v12, 4  ;;  %v423_v30 = vsel %vm422_vm0, %v419_v4, %v421_v5  ;;  %v424_v31 = vsel %vm422_vm0, %v421_v5, %v419_v4 }
 0x2da   :  { %v455_v36 = vrot.slane %v424_v31, 6  ;;  %v456_v37 = vrot.slane %v423_v30, 6 }
 0x2dc   :  { %v483_v38 = vsel %vm246_vm6, %v417_v23, %v455_v36  ;;  %v484_v1 = vsel %vm246_vm6, %v416_v15, %v456_v37  ;;  %v942_v23 = vpop.permute.xlu2 %941 }
 0x2dd   :  { %v486_v40 = vsel %vm485_vm1, %v483_v38, %v461_v6  ;;  %v487_v41 = vsel %vm485_vm1, %v484_v1, %v462_v2  ;;  %v359_v6 = vld [vmem:[%s2452_s1 + $0x10] sm:$0x3f]  ;;  %v1901_v2 = vld [vmem:[%s2452_s1 + $0x18] sm:$0x3f] }
 0x2de   :  { %v1875_v42 = vsel %vm488_vm2, %v486_v40, %v467_v44  ;;  %v1878_v43 = vsel %vm488_vm2, %v487_v41, %v468_v22 }
 0x2df   :  { %v435_v45 = vpop.permute.xlu0 %434 }
 0x2e0   :  { %v433_v13 = vpop.permute.xlu1 %432 }
 0x2e1   :  { %v437_v29 = vsel %vm436_vm5, %v433_v13, %v435_v45  ;;  %v438_v5 = vsel %vm436_vm5, %v435_v45, %v433_v13 }
 0x2e4   :  { %v946_v40 = vpop.permute.xlu2 %945 }
 0x2e7   :  { %v447_v39 = vpop.permute.xlu0 %446 }
 0x2e8   :  { %v451_v9 = vsel %vm450_vm3, %v447_v39, %v449_v47  ;;  %v452_v14 = vsel %vm450_vm3, %v449_v47, %v447_v39  ;;  %v442_v4 = vpop.permute.xlu1 %441 }
 0x2e9   :  { %v479_v51 = vrot.slane %v451_v9, 4  ;;  %v480_v63 = vrot.slane %v452_v14, 4  ;;  %v444_v8 = vsel %vm443_vm4, %v440_v26, %v442_v4  ;;  %v445_v15 = vsel %vm443_vm4, %v442_v4, %v440_v26 }
 0x2ea   :  { %v473_v11 = vrot.slane %v444_v8, 6  ;;  %v474_v12 = vrot.slane %v445_v15, 6  ;;  %v983_v8 = vrot.slane %v1828_v48, 2 }
 0x2ec   :  { %v491_v26 = vsel %vm246_vm6, %v437_v29, %v473_v11  ;;  %v492_v30 = vsel %vm246_vm6, %v438_v5, %v474_v12  ;;  %v966_v13 = vpop.permute.xlu2 %965  ;;  %v984_v29 = vrot.slane %v1831_v49, 2 }
 0x2ed   :  { %v493_v31 = vsel %vm485_vm1, %v491_v26, %v479_v51  ;;  %v494_v36 = vsel %vm485_vm1, %v492_v30, %v480_v63 }
 0x2ee   :  { %v1907_v37 = vmul.f32 %v493_v31, %v359_v6  ;;  %v1910_v22 = vmul.f32 %v494_v36, %v1901_v2 }
 0x2ef   :  { %v940_v44 = vpop.permute.xlu0 %939 }
 0x2f0   :  { %v943_v38 = vsel %vm422_vm0, %v940_v44, %v942_v23  ;;  %505 = vrot.lane.b32.xlu1 %v1910_v22, %s1510_s12  ;;  %546 = vrot.lane.b32.xlu2 %v1907_v37, %s1511_s13  ;;  %v958_v1 = vpop.permute.xlu1 %957  ;;  %v944_v14 = vsel %vm422_vm0, %v942_v23, %v940_v44  ;;  %v640_v10 = vmul.f32 %v1693_v55, %v1907_v37 }
 0x2f1   :  { %501 = vrot.lane.b32.xlu0 %v1907_v37, %s1510_s12  ;;  %v971_v15 = vrot.slane %v944_v14, 6  ;;  %v972_v11 = vrot.slane %v943_v38, 6 }
 0x2f4   :  { %v952_v26 = vpop.permute.xlu2 %951 }
 0x2f7   :  { %v960_v41 = vpop.permute.xlu0 %959 }
 0x2f8   :  { %589 = vrot.lane.b32.xlu2 %v1907_v37, %s1512_s14  ;;  %v948_v45 = vpop.permute.xlu1 %947  ;;  %v961_v4 = vsel %vm443_vm4, %v958_v1, %v960_v41  ;;  %v962_v14 = vsel %vm443_vm4, %v960_v41, %v958_v1 }
 0x2f9   :  { %550 = vrot.lane.b32.xlu0 %v1910_v22, %s1511_s13  ;;  %v949_v47 = vsel %vm429_vm15, %v946_v40, %v948_v45  ;;  %v950_v51 = vsel %vm429_vm15, %v948_v45, %v946_v40  ;;  %v989_v12 = vrot.slane %v961_v4, 6 }
 0x2fa   :  { %v977_v30 = vrot.slane %v950_v51, 4  ;;  %v978_v23 = vrot.slane %v949_v47, 4 }
 0x2ff   :  { %v964_v39 = vpop.permute.xlu0 %963 }
 0x300   :  { %662 = vrot.lane.b32.xlu2 %v1907_v37, %s1513_s15  ;;  %v934_v9 = vpop.permute.xlu1 %933  ;;  %v967_v63 = vsel %vm450_vm3, %v964_v39, %v966_v13 }
 0x301   :  { %593 = vrot.lane.b32.xlu0 %v1910_v22, %s1512_s14  ;;  %v995_v44 = vrot.slane %v967_v63, 4 }
 0x307   :  { %v936_v5 = vpop.permute.xlu0 %935 }
 0x308   :  { %v937_v31 = vsel %vm415_vm14, %v934_v9, %v936_v5  ;;  %v938_v36 = vsel %vm415_vm14, %v936_v5, %v934_v9  ;;  %705 = vrot.lane.b32.xlu2 %v1907_v37, %s1514_s16  ;;  %v954_v48 = vpop.permute.xlu1 %953  ;;  %v990_v5 = vrot.slane %v962_v14, 6 }
 0x309   :  { %v999_v38 = vsel %vm246_vm6, %v938_v36, %v971_v15  ;;  %v1000_v49 = vsel %vm246_vm6, %v937_v31, %v972_v11  ;;  %666 = vrot.lane.b32.xlu0 %v1910_v22, %s1513_s15  ;;  %v955_v40 = vsel %vm436_vm5, %v952_v26, %v954_v48  ;;  %v956_v11 = vsel %vm436_vm5, %v954_v48, %v952_v26 }
 0x30a   :  { %v1001_v45 = vsel %vm485_vm1, %v999_v38, %v977_v30  ;;  %v1002_v47 = vsel %vm485_vm1, %v1000_v49, %v978_v23  ;;  %v1005_v9 = vsel %vm246_vm6, %v955_v40, %v989_v12  ;;  %v968_v30 = vsel %vm450_vm3, %v966_v13, %v964_v39  ;;  %v357_v39 = vld [vmem:[%s2452_s1] sm:$0xff] }
 0x30b   :  { %v1003_v4 = vsel %vm488_vm2, %v1001_v45, %v983_v8  ;;  %v1004_v51 = vsel %vm488_vm2, %v1002_v47, %v984_v29  ;;  %v1007_v63 = vsel %vm485_vm1, %v1005_v9, %v995_v44  ;;  %v1006_v1 = vsel %vm246_vm6, %v956_v11, %v990_v5 }
 0x30c   :  { %v1960_v15 = vmul.f32 %v1007_v63, %v359_v6  ;;  %v996_v41 = vrot.slane %v968_v30, 4  ;;  %v2011_v12 = vmul.f32 %v1875_v42, %v357_v39  ;;  %v2013_v29 = vmul.f32 %v1003_v4, %v357_v39 }
 0x30d   :  { %vm507_vm6 = vcmp.lt.s32.totalorder %v1645_v46, 3 }
 0x30e   :  { %1173 = vrot.lane.b32.xlu1 %v1960_v15, %s1514_s16  ;;  %v1008_v6 = vsel %vm485_vm1, %v1006_v1, %v996_v41 }
 0x30f   :  { %v1975_v8 = vmul.f32 %v1008_v6, %v1901_v2  ;;  %v358_v2 = vld [vmem:[%s2452_s1 + $0x8] sm:$0xff] }
 0x310   :  { %748 = vrot.lane.b32.xlu2 %v1907_v37, %s1515_s17  ;;  %v1999_v13 = vmul.f32 %v1878_v43, %v358_v2  ;;  %v2021_v43 = vmul.f32 %v1004_v51, %v358_v2 }
 0x311   :  { %709 = vrot.lane.b32.xlu0 %v1910_v22, %s1514_s16 }
 0x316   :  { %752 = vrot.lane.b32.xlu1 %v1910_v22, %s1515_s17 }
 0x318   :  { %1053 = vrot.lane.b32.xlu2 %v1975_v8, %s1511_s13 }
 0x319   :  { %1177 = vrot.lane.b32.xlu0 %v1975_v8, %s1514_s16 }
 0x31e   :  { %1083 = vrot.lane.b32.xlu1 %v1960_v15, %s1512_s14 }
 0x320   :  { %1139 = vrot.lane.b32.xlu2 %v1960_v15, %s1513_s15 }
 0x321   :  { %1049 = vrot.lane.b32.xlu0 %v1960_v15, %s1511_s13 }
 0x326   :  { %1143 = vrot.lane.b32.xlu1 %v1975_v8, %s1513_s15 }
 0x328   :  { %1211 = vrot.lane.b32.xlu2 %v1975_v8, %s1515_s17 }
 0x329   :  { %1087 = vrot.lane.b32.xlu0 %v1975_v8, %s1512_s14 }
 0x32e   :  { %1015 = vrot.lane.b32.xlu1 %v1960_v15, %s1510_s12 }
 0x330   :  { %503 = vrot.lane.b32.xlu2 %v1999_v13, %s1510_s12 }
 0x331   :  { %1207 = vrot.lane.b32.xlu0 %v1960_v15, %s1515_s17 }
 0x336   :  { %499 = vrot.lane.b32.xlu1 %v2011_v12, %s1510_s12 }
 0x338   :  { %1081 = vrot.lane.b32.xlu2 %v2013_v29, %s1512_s14 }
 0x339   :  { %587 = vrot.lane.b32.xlu0 %v2011_v12, %s1512_s14 }
 0x33e   :  { %544 = vrot.lane.b32.xlu1 %v2011_v12, %s1511_s13 }
 0x340   :  { %1141 = vrot.lane.b32.xlu2 %v2021_v43, %s1513_s15 }
 0x341   :  { %703 = vrot.lane.b32.xlu0 %v2011_v12, %s1514_s16 }
 0x346   :  { %548 = vrot.lane.b32.xlu1 %v1999_v13, %s1511_s13 }
 0x348   :  { %1013 = vrot.lane.b32.xlu2 %v2013_v29, %s1510_s12 }
 0x349   :  { %1175 = vrot.lane.b32.xlu0 %v2021_v43, %s1514_s16 }
 0x34a   :  { %v2041_v42 = vpop.permute.xlu2 %546 }
 0x34e   :  { %591 = vrot.lane.b32.xlu1 %v1999_v13, %s1512_s14 }
 0x351   :  { %750 = vrot.lane.b32.xlu0 %v1999_v13, %s1515_s17 }
 0x352   :  { %v2050_v26 = vpop.permute.xlu2 %589 }
 0x356   :  { %660 = vrot.lane.b32.xlu1 %v2011_v12, %s1513_s15 }
 0x359   :  { %1051 = vrot.lane.b32.xlu0 %v2021_v43, %s1511_s13 }
 0x35a   :  { %v2062_v38 = vpop.permute.xlu2 %662 }
 0x35e   :  { %664 = vrot.lane.b32.xlu1 %v1999_v13, %s1513_s15 }
 0x361   :  { %1137 = vrot.lane.b32.xlu0 %v2013_v29, %s1513_s15 }
 0x362   :  { %v506_v23 = vpop.permute.xlu1 %505  ;;  %v2070_v40 = vpop.permute.xlu2 %705 }
 0x363   :  { %v502_v31 = vpop.permute.xlu0 %501 }
 0x364   :  { %v509_v36 = vsel %vm507_vm6, %v502_v31, %v506_v23  ;;  %v511_v48 = vsel %vm507_vm6, %v506_v23, %v502_v31 }
 0x365   :  { %v524_v18 = vmul.f32 %v1687_v52, %v511_v48  ;;  %v525_v32 = vmul.f32 %v1687_v52, %v509_v36 }
 0x366   :  { %707 = vrot.lane.b32.xlu1 %v1999_v13, %s1514_s16 }
 0x369   :  { %1209 = vrot.lane.b32.xlu0 %v2021_v43, %s1515_s17 }
 0x36a   :  { %v2078_v47 = vpop.permute.xlu2 %748 }
 0x36b   :  { %v2060_v44 = vpop.permute.xlu0 %550 }
 0x36e   :  { %1171 = vrot.lane.b32.xlu1 %v2013_v29, %s1514_s16 }
 0x371   :  { %1019 = vrot.lane.b32.xlu0 %v1975_v8, %s1510_s12 }
 0x372   :  { %v2086_v51 = vpop.permute.xlu2 %1053 }
 0x373   :  { %v2068_v49 = vpop.permute.xlu0 %593 }
 0x376   :  { %746 = vrot.lane.b32.xlu1 %v2011_v12, %s1515_s17 }
 0x37a   :  { %v2101_v41 = vpop.permute.xlu2 %1139 }
 0x37b   :  { %v2074_v45 = vpop.permute.xlu0 %666 }
 0x37e   :  { %1047 = vrot.lane.b32.xlu1 %v2013_v29, %s1511_s13 }
 0x380   :  { %v1174_v9 = vpop.permute.xlu1 %1173 }
 0x382   :  { %v2116_v31 = vpop.permute.xlu2 %1211 }
 0x383   :  { %v2080_v14 = vpop.permute.xlu0 %709 }
 0x386   :  { %1085 = vrot.lane.b32.xlu1 %v2021_v43, %s1512_s14 }
 0x388   :  { %v2084_v4 = vpop.permute.xlu1 %752 }
 0x38a   :  { %v504_v34 = vpop.permute.xlu2 %503 }
 0x38b   :  { %v1178_v63 = vpop.permute.xlu0 %1177 }
 0x38c   :  { %v2091_v11 = vsel %vm711_vm7, %v1174_v9, %v1178_v63  ;;  %v2095_v5 = vsel %vm711_vm7, %v1178_v63, %v1174_v9  ;;  %v641_v63 = vmul.f32 %v1693_v55, %v1910_v22  ;;  %v638_v22 = vmul.f32 %v1711_v3, %v2011_v12 }
 0x38e   :  { %1205 = vrot.lane.b32.xlu1 %v2013_v29, %s1515_s17  ;;  %v650_v19 = vsel %vm488_vm2, %v641_v63, 0.0 }
 0x390   :  { %v1084_v30 = vpop.permute.xlu1 %1083 }
 0x393   :  { %v2099_v1 = vpop.permute.xlu0 %1049 }
 0x396   :  { %1017 = vrot.lane.b32.xlu1 %v2021_v43, %s1510_s12 }
 0x398   :  { %v2105_v6 = vpop.permute.xlu1 %1143 }
 0x39b   :  { %v1088_v2 = vpop.permute.xlu0 %1087 }
 0x39c   :  { %v2110_v39 = vsel %vm595_vm8, %v1084_v30, %v1088_v2  ;;  %v2114_v23 = vsel %vm595_vm8, %v1088_v2, %v1084_v30  ;;  %v639_v30 = vmul.f32 %v1711_v3, %v1999_v13  ;;  %v642_v2 = vsel %vm488_vm2, %v640_v10, 0.0 }
 0x39d   :  { %v643_v17 = vadd.f32 %v642_v2, %v638_v22  ;;  %v526_v13 = vsel %vm488_vm2, %v524_v18, 0.0  ;;  %v534_v10 = vsel %vm488_vm2, %v525_v32, 0.0  ;;  %v556_v32 = vsel %vm552_vm9, %v2060_v44, %v2041_v42 }
 0x39e   :  { %v651_v63 = vadd.f32 %v650_v19, %v639_v30  ;;  %v567_v22 = vmul.f32 %v1703_v59, %v556_v32  ;;  %v1115_v32 = vmul.f32 %v2013_v29, %v1711_v3  ;;  %v1116_v29 = vmul.f32 %v2021_v43, %v1711_v3 }
 0x39f   :  { %v644_v25 = vrot.slane %v643_v17, 4 }
 0x3a0   :  { %v2118_v9 = vpop.permute.xlu1 %1015  ;;  %v652_v12 = vrot.slane %v651_v63, 4 }
 0x3a2   :  { %v653_v24 = vadd.f32 %v652_v12, %v651_v63  ;;  %v1117_v12 = vmul.f32 %v1960_v15, %v1693_v55 }
 0x3a3   :  { %v2122_v0 = vpop.permute.xlu0 %1207 }
 0x3a4   :  { %v654_v18 = vrot.slane %v653_v24, 2 }
 0x3a8   :  { %v500_v33 = vpop.permute.xlu1 %499 }
 0x3a9   :  { %v508_v35 = vsel %vm507_vm6, %v500_v33, %v504_v34  ;;  %v510_v37 = vsel %vm507_vm6, %v504_v34, %v500_v33  ;;  %v645_v33 = vadd.f32 %v644_v25, %v643_v17 }
 0x3aa   :  { %v522_v48 = vmul.f32 %v1707_v61, %v510_v37  ;;  %v523_v36 = vmul.f32 %v1707_v61, %v508_v35  ;;  %v554_v35 = vsel %vm552_vm9, %v2041_v42, %v2060_v44 }
 0x3ab   :  { %v588_v16 = vpop.permute.xlu0 %587  ;;  %v646_v2 = vrot.slane %v645_v33, 2  ;;  %v568_v17 = vmul.f32 %v1703_v59, %v554_v35  ;;  %v569_v35 = vsel %vm488_vm2, %v567_v22, 0.0 }
 0x3ac   :  { %v527_v28 = vadd.f32 %v526_v13, %v522_v48  ;;  %v535_v27 = vadd.f32 %v534_v10, %v523_v36  ;;  %v655_v13 = vadd.f32 %v654_v18, %v653_v24  ;;  %v597_v24 = vsel %vm595_vm8, %v2050_v26, %v2068_v49 }
 0x3ad   :  { %v647_v44 = vadd.f32 %v646_v2, %v645_v33  ;;  %v1118_v18 = vmul.f32 %v1975_v8, %v1693_v55 }
 0x3ae   :  { %v528_v34 = vrot.slane %v527_v28, 4  ;;  %v536_v19 = vrot.slane %v535_v27, 4 }
 0x3b0   :  { %v545_v21 = vpop.permute.xlu1 %544  ;;  %v529_v25 = vadd.f32 %v528_v34, %v527_v28  ;;  %v537_v37 = vadd.f32 %v536_v19, %v535_v27  ;;  %v577_v27 = vsel %vm488_vm2, %v568_v17, 0.0  ;;  %v656_v17 = vrot.slane %v655_v13, 1 }
 0x3b2   :  { %v530_v28 = vrot.slane %v529_v25, 2  ;;  %v538_v34 = vrot.slane %v537_v37, 2 }
 0x3b3   :  { %v2143_v30 = vpop.permute.xlu0 %703 }
 0x3b4   :  { %v531_v20 = vadd.f32 %v530_v28, %v529_v25  ;;  %v539_v61 = vadd.f32 %v538_v34, %v537_v37 }
 0x3b6   :  { %v532_v3 = vrot.slane %v531_v20, 1  ;;  %v540_v43 = vrot.slane %v539_v61, 1 }
 0x3b8   :  { %v549_v63 = vpop.permute.xlu1 %548 }
 0x3b9   :  { %v553_v48 = vsel %vm552_vm9, %v545_v21, %v549_v63  ;;  %v555_v36 = vsel %vm552_vm9, %v549_v63, %v545_v21  ;;  %v599_v21 = vsel %vm595_vm8, %v2068_v49, %v2050_v26  ;;  %v1119_v63 = vsel %vm488_vm2, %v1117_v12, 0.0 }
 0x3ba   :  { %v565_v10 = vmul.f32 %v1689_v53, %v555_v36  ;;  %v566_v42 = vmul.f32 %v1689_v53, %v553_v48  ;;  %v610_v48 = vmul.f32 %v1709_v62, %v599_v21  ;;  %v611_v36 = vmul.f32 %v1709_v62, %v597_v24 }
 0x3bb   :  { %v2165_v19 = vpop.permute.xlu0 %1175  ;;  %v1120_v12 = vadd.f32 %v1119_v63, %v1115_v32  ;;  %v2203_v63 = vld [vmem:[%s2453_s2 + $0x8] sm:$0x7f] }
 0x3bc   :  { %v570_v33 = vadd.f32 %v569_v35, %v565_v10  ;;  %v578_v15 = vadd.f32 %v577_v27, %v566_v42  ;;  %v648_v42 = vrot.slane %v647_v44, 1  ;;  %v1127_v35 = vsel %vm488_vm2, %v1118_v18, 0.0  ;;  %v2198_v18 = vld [vmem:[%s2453_s2] sm:$0x7f]  ;;  %s1516_s2 = smov [#allocation5]  }
 0x3bd   :  { %v612_v28 = vsel %vm488_vm2, %v610_v48, 0.0  ;;  %v620_v34 = vsel %vm488_vm2, %v611_v36, 0.0  ;;  %s1348_s6 = sshll.u32 %s1516_s2, 4  ;;  %s1349_s6 = int_to_ptr.vmem [resolvable:$true] %s1348_s6 }
 0x3be   :  { %v571_v2 = vrot.slane %v570_v33, 4  ;;  %v579_v22 = vrot.slane %v578_v15, 4 }
 0x3c0   :  { %v572_v26 = vadd.f32 %v571_v2, %v570_v33  ;;  %v580_v49 = vadd.f32 %v579_v22, %v578_v15  ;;  %v592_v10 = vpop.permute.xlu1 %591  ;;  %v657_v2 = vadd.f32 %v656_v17, %v655_v13  ;;  %v649_v22 = vadd.f32 %v648_v42, %v647_v44  ;;  %v2208_v17 = vpop.permute.xlu2 %1081 }
 0x3c1   :  { %v596_v55 = vsel %vm595_vm8, %v588_v16, %v592_v10  ;;  %v598_v8 = vsel %vm595_vm8, %v592_v10, %v588_v16 }
 0x3c2   :  { %v573_v27 = vrot.slane %v572_v26, 2  ;;  %v581_v24 = vrot.slane %v580_v49, 2  ;;  %v608_v25 = vmul.f32 %v1691_v54, %v598_v8  ;;  %v609_v37 = vmul.f32 %v1691_v54, %v596_v55 }
 0x3c3   :  { %v2193_v21 = vpop.permute.xlu0 %750  ;;  %v1121_v8 = vrot.slane %v1120_v12, 4  ;;  %v659_v13 = vmul.f32 %v657_v2, %v2203_v63  ;;  %v658_v44 = vmul.f32 %v649_v22, %v2198_v18 }
 0x3c4   :  { %v574_v33 = vadd.f32 %v573_v27, %v572_v26  ;;  %v582_v15 = vadd.f32 %v581_v24, %v580_v49  ;;  %v613_v16 = vadd.f32 %v612_v28, %v608_v25  ;;  %v621_v32 = vadd.f32 %v620_v34, %v609_v37 }
 0x3c5   :  { %v533_v26 = vadd.f32 %v532_v3, %v531_v20  ;;  %v541_v49 = vadd.f32 %v540_v43, %v539_v61  ;;  %v1128_v27 = vadd.f32 %v1127_v35, %v1116_v29 }
 0x3c6   :  { %v575_v48 = vrot.slane %v574_v33, 1  ;;  %v583_v36 = vrot.slane %v582_v15, 1  ;;  %v614_v10 = vrot.slane %v613_v16, 4  ;;  %v622_v55 = vrot.slane %v621_v32, 4 }
 0x3c7   :  { %v542_v29 = vmul.f32 %v533_v26, %v2198_v18  ;;  %v543_v35 = vmul.f32 %v541_v49, %v2203_v63  ;;  %v800_v49 = vrot.slane %v659_v13, 1 }
 0x3c8   :  { %v576_v24 = vadd.f32 %v575_v48, %v574_v33  ;;  %v584_v25 = vadd.f32 %v583_v36, %v582_v15  ;;  %v615_v37 = vadd.f32 %v614_v10, %v613_v16  ;;  %v623_v28 = vadd.f32 %v622_v55, %v621_v32  ;;  %v661_v34 = vpop.permute.xlu1 %660 }
 0x3c9   :  { %v2216_v33 = vadd.f32 %v1121_v8, %v1120_v12  ;;  %v1129_v15 = vrot.slane %v1128_v27, 4  ;;  %v670_v48 = vsel %vm668_vm10, %v2062_v38, %v2074_v45  ;;  %v672_v36 = vsel %vm668_vm10, %v2074_v45, %v2062_v38 }
 0x3ca   :  { %v585_v42 = vmul.f32 %v576_v24, %v2198_v18  ;;  %v586_v20 = vmul.f32 %v584_v25, %v2203_v63  ;;  %v616_v61 = vrot.slane %v615_v37, 2  ;;  %v624_v3 = vrot.slane %v623_v28, 2 }
 0x3cb   :  { %v2214_v43 = vpop.permute.xlu0 %1051  ;;  %v799_v8 = vrot.slane %v658_v44, 1  ;;  %v1123_v24 = vrot.slane %v2216_v33, 2  ;;  %v1130_v25 = vadd.f32 %v1129_v15, %v1128_v27  ;;  %v1146_v38 = vsel %vm668_vm10, %v2101_v41, %v2105_v6 }
 0x3cc   :  { %v791_v16 = vrot.slane %v585_v42, 1  ;;  %v792_v32 = vrot.slane %v586_v20, 1  ;;  %v617_v2 = vadd.f32 %v616_v61, %v615_v37  ;;  %v625_v22 = vadd.f32 %v624_v3, %v623_v28 }
 0x3cd   :  { %v683_v37 = vmul.f32 %v1713_v7, %v670_v48  ;;  %v684_v28 = vmul.f32 %v1713_v7, %v672_v36  ;;  %v1148_v45 = vsel %vm668_vm10, %v2105_v6, %v2101_v41  ;;  %v713_v15 = vsel %vm711_vm7, %v2070_v40, %v2080_v14 }
 0x3ce   :  { %v795_v10 = vadd.f32 %v791_v16, %v542_v29  ;;  %v796_v55 = vadd.f32 %v792_v32, %v543_v35  ;;  %v618_v26 = vrot.slane %v617_v2, 1  ;;  %v626_v12 = vrot.slane %v625_v22, 1 }
 0x3cf   :  { %v715_v41 = vsel %vm711_vm7, %v2080_v14, %v2070_v40  ;;  %v1151_v16 = vmul.f32 %v1146_v38, %v1713_v7  ;;  %v1152_v32 = vmul.f32 %v1148_v45, %v1713_v7  ;;  %v685_v36 = vsel %vm488_vm2, %v683_v37, 0.0 }
 0x3d0   :  { %v619_v42 = vadd.f32 %v618_v26, %v617_v2  ;;  %v627_v20 = vadd.f32 %v626_v12, %v625_v22  ;;  %v665_v61 = vpop.permute.xlu1 %664  ;;  %v1142_v2 = vpop.permute.xlu2 %1141  ;;  %v693_v26 = vsel %vm488_vm2, %v684_v28, 0.0  ;;  %v726_v38 = vmul.f32 %v1699_v57, %v713_v15 }
 0x3d1   :  { %v669_v27 = vsel %vm668_vm10, %v661_v34, %v665_v61  ;;  %v671_v13 = vsel %vm668_vm10, %v665_v61, %v661_v34  ;;  %v1131_v34 = vrot.slane %v1130_v25, 2  ;;  %v727_v7 = vmul.f32 %v1699_v57, %v715_v41 }
 0x3d2   :  { %v628_v44 = vmul.f32 %v619_v42, %v2198_v18  ;;  %v629_v3 = vmul.f32 %v627_v20, %v2203_v63  ;;  %v681_v29 = vmul.f32 %v1695_v50, %v669_v27  ;;  %v682_v35 = vmul.f32 %v1695_v50, %v671_v13 }
 0x3d3   :  { %v1138_v6 = vpop.permute.xlu0 %1137  ;;  %v1153_v37 = vsel %vm488_vm2, %v1151_v16, 0.0  ;;  %v1161_v28 = vsel %vm488_vm2, %v1152_v32, 0.0  ;;  %v756_v16 = vsel %vm754_vm11, %v2078_v47, %v2084_v4  ;;  %v1124_v32 = vadd.f32 %v1123_v24, %v2216_v33 }
 0x3d4   :  { %v803_v22 = vadd.f32 %v799_v8, %v628_v44  ;;  %v804_v48 = vadd.f32 %v800_v49, %v629_v3  ;;  %v1145_v12 = vsel %vm668_vm10, %v1138_v6, %v1142_v2  ;;  %v1147_v40 = vsel %vm668_vm10, %v1142_v2, %v1138_v6 }
 0x3d5   :  { %v686_v20 = vadd.f32 %v685_v36, %v681_v29  ;;  %v694_v61 = vadd.f32 %v693_v26, %v682_v35  ;;  %v1149_v49 = vmul.f32 %v1145_v12, %v1695_v50  ;;  %v1150_v8 = vmul.f32 %v1147_v40, %v1695_v50 }
 0x3d6   :  { %v815_v14 = vrot.slane %v803_v22, 2  ;;  %v816_v42 = vrot.slane %v804_v48, 2  ;;  %v736_v6 = vsel %vm488_vm2, %v727_v7, 0.0  ;;  %v758_v36 = vsel %vm754_vm11, %v2084_v4, %v2078_v47 }
 0x3d7   :  { %v1154_v44 = vadd.f32 %v1153_v37, %v1149_v49  ;;  %v1162_v3 = vadd.f32 %v1161_v28, %v1150_v8  ;;  %v687_v50 = vrot.slane %v686_v20, 4  ;;  %v695_v15 = vrot.slane %v694_v61, 4 }
 0x3d8   :  { %v2268_v45 = vadd.f32 %v815_v14, %v795_v10  ;;  %v2270_v27 = vadd.f32 %v816_v42, %v796_v55  ;;  %v708_v13 = vpop.permute.xlu1 %707  ;;  %v728_v55 = vsel %vm488_vm2, %v726_v38, 0.0  ;;  %v1185_v26 = vmul.f32 %v2091_v11, %v1699_v57 }
 0x3d9   :  { %v712_v29 = vsel %vm711_vm7, %v2143_v30, %v708_v13  ;;  %v714_v35 = vsel %vm711_vm7, %v708_v13, %v2143_v30  ;;  %v1155_v2 = vrot.slane %v1154_v44, 4  ;;  %v1163_v22 = vrot.slane %v1162_v3, 4 }
 0x3da   :  { %v724_v41 = vmul.f32 %v1697_v56, %v712_v29  ;;  %v725_v10 = vmul.f32 %v1697_v56, %v714_v35  ;;  %v2293_v12 = vadd.f32 %v1131_v34, %v1130_v25  ;;  %v688_v40 = vadd.f32 %v687_v50, %v686_v20 }
 0x3db   :  { %v696_v14 = vadd.f32 %v695_v15, %v694_v61  ;;  %v769_v33 = vmul.f32 %v1701_v58, %v756_v16  ;;  %v1186_v24 = vmul.f32 %v2095_v5, %v1699_v57  ;;  %v1058_v7 = vsel %vm552_vm9, %v2086_v51, %v2099_v1 }
 0x3dc   :  { %v729_v30 = vadd.f32 %v728_v55, %v724_v41  ;;  %v737_v48 = vadd.f32 %v736_v6, %v725_v10  ;;  %v1125_v47 = vrot.slane %v1124_v32, 1  ;;  %v1156_v4 = vadd.f32 %v1155_v2, %v1154_v44 }
 0x3dd   :  { %v1164_v49 = vadd.f32 %v1163_v22, %v1162_v3  ;;  %v770_v20 = vmul.f32 %v1701_v58, %v758_v36  ;;  %v1056_v61 = vsel %vm552_vm9, %v2099_v1, %v2086_v51  ;;  %v1187_v8 = vsel %vm488_vm2, %v1185_v26, 0.0 }
 0x3de   :  { %v730_v42 = vrot.slane %v729_v30, 4  ;;  %v738_v38 = vrot.slane %v737_v48, 4  ;;  %v1061_v37 = vmul.f32 %v1058_v7, %v1703_v59  ;;  %v689_v28 = vrot.slane %v688_v40, 2 }
 0x3df   :  { %v697_v13 = vrot.slane %v696_v14, 2  ;;  %v1195_v1 = vsel %vm488_vm2, %v1186_v24, 0.0  ;;  %v1062_v35 = vmul.f32 %v1056_v61, %v1703_v59  ;;  %v1157_v50 = vrot.slane %v1156_v4, 2 }
 0x3e0   :  { %v731_v11 = vadd.f32 %v730_v42, %v729_v30  ;;  %v739_v25 = vadd.f32 %v738_v38, %v737_v48  ;;  %v1172_v34 = vpop.permute.xlu1 %1171  ;;  %v1165_v15 = vrot.slane %v1164_v49, 2  ;;  %v2320_v55 = vadd.f32 %v1125_v47, %v1124_v32 }
 0x3e1   :  { %v1179_v57 = vsel %vm711_vm7, %v1172_v34, %v2165_v19  ;;  %v1181_v5 = vsel %vm711_vm7, %v2165_v19, %v1172_v34  ;;  %v771_v19 = vsel %vm488_vm2, %v769_v33, 0.0  ;;  %v779_v6 = vsel %vm488_vm2, %v770_v20, 0.0 }
 0x3e2   :  { %v732_v44 = vrot.slane %v731_v11, 2  ;;  %v740_v3 = vrot.slane %v739_v25, 2  ;;  %v1183_v29 = vmul.f32 %v1179_v57, %v1697_v56  ;;  %v1184_v51 = vmul.f32 %v1181_v5, %v1697_v56 }
 0x3e3   :  { %v1063_v16 = vsel %vm488_vm2, %v1061_v37, 0.0  ;;  %v690_v2 = vadd.f32 %v689_v28, %v688_v40  ;;  %v698_v22 = vadd.f32 %v697_v13, %v696_v14  ;;  %v1071_v59 = vsel %vm488_vm2, %v1062_v35, 0.0 }
 0x3e4   :  { %v1188_v41 = vadd.f32 %v1187_v8, %v1183_v29  ;;  %v1196_v10 = vadd.f32 %v1195_v1, %v1184_v51  ;;  %v733_v30 = vadd.f32 %v732_v44, %v731_v11  ;;  %v741_v56 = vadd.f32 %v740_v3, %v739_v25 }
 0x3e5   :  { %v1095_v26 = vmul.f32 %v2114_v23, %v1709_v62  ;;  %v1158_v42 = vadd.f32 %v1157_v50, %v1156_v4  ;;  %v1166_v38 = vadd.f32 %v1165_v15, %v1164_v49  ;;  %v691_v14 = vrot.slane %v690_v2, 1 }
 0x3e6   :  { %v1189_v48 = vrot.slane %v1188_v41, 4  ;;  %v1197_v36 = vrot.slane %v1196_v10, 4  ;;  %v699_v47 = vrot.slane %v698_v22, 1  ;;  %v734_v23 = vrot.slane %v733_v30, 1 }
 0x3e7   :  { %v742_v4 = vrot.slane %v741_v56, 1  ;;  %v1159_v20 = vrot.slane %v1158_v42, 1  ;;  %v1167_v61 = vrot.slane %v1166_v38, 1  ;;  %v1096_v8 = vmul.f32 %v2110_v39, %v1709_v62 }
 0x3e8   :  { %v747_v33 = vpop.permute.xlu1 %746  ;;  %v1190_v32 = vadd.f32 %v1189_v48, %v1188_v41  ;;  %v1198_v24 = vadd.f32 %v1197_v36, %v1196_v10  ;;  %v2338_v37 = vsel %vm488_vm2, %v1095_v26, 0.0  ;;  %v692_v13 = vadd.f32 %v691_v14, %v690_v2 }
 0x3e9   :  { %v755_v7 = vsel %vm754_vm11, %v747_v33, %v2193_v21  ;;  %v757_v40 = vsel %vm754_vm11, %v2193_v21, %v747_v33  ;;  %v700_v44 = vadd.f32 %v699_v47, %v698_v22  ;;  %v735_v51 = vadd.f32 %v734_v23, %v733_v30  ;;  %v1210_v47 = vpop.permute.xlu0 %1209 }
 0x3ea   :  { %v767_v11 = vmul.f32 %v1705_v60, %v755_v7  ;;  %v768_v25 = vmul.f32 %v1705_v60, %v757_v40  ;;  %v1191_v49 = vrot.slane %v1190_v32, 2  ;;  %v1199_v34 = vrot.slane %v1198_v24, 2 }
 0x3eb   :  { %v743_v1 = vadd.f32 %v742_v4, %v741_v56  ;;  %v1160_v15 = vadd.f32 %v1159_v20, %v1158_v42  ;;  %v1168_v41 = vadd.f32 %v1167_v61, %v1166_v38  ;;  %v744_v26 = vmul.f32 %v735_v51, %v2198_v18 }
 0x3ec   :  { %v772_v57 = vadd.f32 %v771_v19, %v767_v11  ;;  %v780_v5 = vadd.f32 %v779_v6, %v768_v25  ;;  %v1192_v21 = vadd.f32 %v1191_v49, %v1190_v32  ;;  %v1200_v28 = vadd.f32 %v1199_v34, %v1198_v24 }
 0x3ed   :  { %v745_v42 = vmul.f32 %v743_v1, %v2203_v63  ;;  %v1170_v14 = vmul.f32 %v1168_v41, %v2203_v63  ;;  %v1214_v23 = vsel %vm754_vm11, %v2122_v0, %v2116_v31  ;;  %v807_v34 = vrot.slane %v744_v26, 1 }
 0x3ee   :  { %v773_v3 = vrot.slane %v772_v57, 4  ;;  %v781_v29 = vrot.slane %v780_v5, 4  ;;  %v1193_v35 = vrot.slane %v1192_v21, 1  ;;  %v1201_v50 = vrot.slane %v1200_v28, 1 }
 0x3ef   :  { %v808_v20 = vrot.slane %v745_v42, 1  ;;  %v1216_v1 = vsel %vm754_vm11, %v2116_v31, %v2122_v0 }
 0x3f0   :  { %v774_v19 = vadd.f32 %v773_v3, %v772_v57  ;;  %v782_v10 = vadd.f32 %v781_v29, %v780_v5  ;;  %v1048_v6 = vpop.permute.xlu1 %1047  ;;  %v1194_v48 = vadd.f32 %v1193_v35, %v1192_v21  ;;  %v1202_v62 = vadd.f32 %v1201_v50, %v1200_v28 }
 0x3f1   :  { %v1055_v39 = vsel %vm552_vm9, %v1048_v6, %v2214_v43  ;;  %v1057_v2 = vsel %vm552_vm9, %v2214_v43, %v1048_v6  ;;  %v1169_v43 = vmul.f32 %v1160_v15, %v2198_v18  ;;  %v702_v3 = vmul.f32 %v700_v44, %v2203_v63 }
 0x3f2   :  { %v775_v22 = vrot.slane %v774_v19, 2  ;;  %v783_v30 = vrot.slane %v782_v10, 2  ;;  %v1059_v56 = vmul.f32 %v1057_v2, %v1689_v53  ;;  %v1060_v36 = vmul.f32 %v1055_v39, %v1689_v53 }
 0x3f3   :  { %v1203_v38 = vmul.f32 %v1194_v48, %v2198_v18  ;;  %v1204_v33 = vmul.f32 %v1202_v62, %v2203_v63  ;;  %v1105_v53 = vsel %vm488_vm2, %v1096_v8, 0.0  ;;  %v701_v8 = vmul.f32 %v692_v13, %v2198_v18 }
 0x3f4   :  { %v776_v32 = vadd.f32 %v775_v22, %v774_v19  ;;  %v784_v24 = vadd.f32 %v783_v30, %v782_v10  ;;  %v1064_v7 = vadd.f32 %v1063_v16, %v1059_v56  ;;  %v1072_v40 = vadd.f32 %v1071_v59, %v1060_v36  ;;  %v1020_v56 = vpop.permute.xlu0 %1019 }
 0x3f5   :  { %v1257_v11 = vrot.slane %v1203_v38, 1  ;;  %v1258_v25 = vrot.slane %v1204_v33, 1  ;;  %v1219_v35 = vmul.f32 %v1214_v23, %v1701_v58  ;;  %v811_v44 = vadd.f32 %v807_v34, %v701_v8 }
 0x3f6   :  { %v777_v4 = vrot.slane %v776_v32, 1  ;;  %v785_v49 = vrot.slane %v784_v24, 1  ;;  %v1065_v5 = vrot.slane %v1064_v7, 4  ;;  %v1073_v21 = vrot.slane %v1072_v40, 4 }
 0x3f7   :  { %v2359_v16 = vadd.f32 %v1257_v11, %v1169_v43  ;;  %v2361_v59 = vadd.f32 %v1258_v25, %v1170_v14  ;;  %v812_v15 = vadd.f32 %v808_v20, %v702_v3  ;;  %v1220_v0 = vmul.f32 %v1216_v1, %v1701_v58  ;;  %v1014_v3 = vpop.permute.xlu2 %1013 }
 0x3f8   :  { %v778_v61 = vadd.f32 %v777_v4, %v776_v32  ;;  %v786_v57 = vadd.f32 %v785_v49, %v784_v24  ;;  %v1086_v28 = vpop.permute.xlu1 %1085  ;;  %v1074_v48 = vadd.f32 %v1073_v21, %v1072_v40  ;;  %v1133_v22 = vrot.slane %v2293_v12, 1 }
 0x3f9   :  { %v1089_v29 = vsel %vm595_vm8, %v2208_v17, %v1086_v28  ;;  %v1091_v51 = vsel %vm595_vm8, %v1086_v28, %v2208_v17  ;;  %v1066_v17 = vadd.f32 %v1065_v5, %v1064_v7  ;;  %v1221_v30 = vsel %vm488_vm2, %v1219_v35, 0.0 }
 0x3fa   :  { %v787_v50 = vmul.f32 %v778_v61, %v2198_v18  ;;  %v788_v13 = vmul.f32 %v786_v57, %v2203_v63  ;;  %v1093_v41 = vmul.f32 %v1091_v51, %v1691_v54  ;;  %v1094_v19 = vmul.f32 %v1089_v29, %v1691_v54 }
 0x3fb   :  { %v1135_v36 = vmul.f32 %v2320_v55, %v2198_v18  ;;  %v1067_v33 = vrot.slane %v1066_v17, 2  ;;  %v1075_v32 = vrot.slane %v1074_v48, 2  ;;  %v1229_v43 = vsel %vm488_vm2, %v1220_v0, 0.0 }
 0x3fc   :  { %v823_v10 = vrot.slane %v787_v50, 2  ;;  %v824_v6 = vrot.slane %v788_v13, 2  ;;  %v1098_v62 = vadd.f32 %v2338_v37, %v1093_v41  ;;  %v1106_v39 = vadd.f32 %v1105_v53, %v1094_v19 }
 0x3fd   :  { %v1022_v55 = vsel %vm507_vm6, %v2118_v9, %v1020_v56  ;;  %v1068_v20 = vadd.f32 %v1067_v33, %v1066_v17  ;;  %v1249_v1 = vrot.slane %v1135_v36, 1 }
 0x3fe   :  { %v827_v31 = vadd.f32 %v823_v10, %v811_v44  ;;  %v828_v2 = vadd.f32 %v824_v6, %v812_v15  ;;  %v1099_v54 = vrot.slane %v1098_v62, 4  ;;  %v1107_v26 = vrot.slane %v1106_v39, 4  ;;  %v2495_v10 = vld [vmem:[#allocation8_spill] sm:$0xff] }
 0x3ff   :  { %v1028_v28 = vmul.f32 %v1022_v55, %v1687_v52  ;;  %v1069_v29 = vrot.slane %v1068_v20, 1 }
 0x400   :  { %v831_v42 = vrot.slane %v827_v31, 4  ;;  %v832_v38 = vrot.slane %v828_v2, 4  ;;  %v1206_v37 = vpop.permute.xlu1 %1205  ;;  %v1100_v24 = vadd.f32 %v1099_v54, %v1098_v62  ;;  %v1108_v7 = vadd.f32 %v1107_v26, %v1106_v39 }
 0x401   :  { %v1213_v58 = vsel %vm754_vm11, %v1206_v37, %v1210_v47  ;;  %v1215_v40 = vsel %vm754_vm11, %v1210_v47, %v1206_v37  ;;  %v1076_v47 = vadd.f32 %v1075_v32, %v1074_v48  ;;  %v1037_v17 = vsel %vm488_vm2, %v1028_v28, 0.0 }
 0x402   :  { %v835_v14 = vadd.f32 %v831_v42, %v2268_v45  ;;  %v836_v11 = vadd.f32 %v832_v38, %v2270_v27  ;;  %v1101_v25 = vrot.slane %v1100_v24, 2  ;;  %v1109_v53 = vrot.slane %v1108_v7, 2 }
 0x403   :  { %v1217_v23 = vmul.f32 %v1213_v58, %v1705_v60  ;;  %v1218_v4 = vmul.f32 %v1215_v40, %v1705_v60  ;;  %v1024_v45 = vsel %vm507_vm6, %v1020_v56, %v2118_v9  ;;  %v1134_v27 = vadd.f32 %v1133_v22, %v2293_v12 }
 0x404   :  { %v1368_v49 = vmul.f32 -1.442695, %v835_v14  ;;  %v1369_v34 = vmul.f32 -1.442695, %v836_v11  ;;  %v1102_v61 = vadd.f32 %v1101_v25, %v1100_v24  ;;  %v1110_v57 = vadd.f32 %v1109_v53, %v1108_v7 }
 0x405   :  { %v1222_v5 = vadd.f32 %v1221_v30, %v1217_v23  ;;  %v1230_v21 = vadd.f32 %v1229_v43, %v1218_v4  ;;  %v1077_v51 = vrot.slane %v1076_v47, 1  ;;  %v1027_v41 = vmul.f32 %v1024_v45, %v1687_v52 }
 0x406   :  { %1425 = vpow2.f32 %v1368_v49  ;;  %v1103_v8 = vrot.slane %v1102_v61, 1  ;;  %v1111_v44 = vrot.slane %v1110_v57, 1  ;;  %v1070_v31 = vadd.f32 %v1069_v29, %v1068_v20 }
 0x407   :  { %1427 = vpow2.f32 %v1369_v34  ;;  %v1223_v60 = vrot.slane %v1222_v5, 4  ;;  %v1231_v35 = vrot.slane %v1230_v21, 4  ;;  %v1078_v52 = vadd.f32 %v1077_v51, %v1076_v47 }
 0x408   :  { %v1018_v50 = vpop.permute.xlu1 %1017  ;;  %v1104_v13 = vadd.f32 %v1103_v8, %v1102_v61  ;;  %v1112_v36 = vadd.f32 %v1111_v44, %v1110_v57  ;;  %v1029_v46 = vsel %vm488_vm2, %v1027_v41, 0.0  ;;  %v1136_v33 = vmul.f32 %v1134_v27, %v2203_v63 }
 0x409   :  { %v1224_v15 = vadd.f32 %v1223_v60, %v1222_v5  ;;  %v1021_v9 = vsel %vm507_vm6, %v1014_v3, %v1018_v50  ;;  %v1232_v12 = vadd.f32 %v1231_v35, %v1230_v21  ;;  %v1023_v19 = vsel %vm507_vm6, %v1018_v50, %v1014_v3 }
 0x40a   :  { %v1026_v6 = vmul.f32 %v1021_v9, %v2495_v10  ;;  %v1113_v48 = vmul.f32 %v1104_v13, %v2198_v18  ;;  %v1025_v39 = vmul.f32 %v1023_v19, %v2495_v10  ;;  %v2417_v24 = vmul.f32 %v1070_v31, %v2198_v18 }
 0x40b   :  { %v1225_v62 = vrot.slane %v1224_v15, 2  ;;  %v1233_v2 = vrot.slane %v1232_v12, 2  ;;  %v1080_v7 = vmul.f32 %v1078_v52, %v2203_v63  ;;  %v1114_v58 = vmul.f32 %v1112_v36, %v2203_v63 }
 0x40c   :  { %v1426_v0 = vpop.eup %1425  ;;  %v1038_v22 = vadd.f32 %v1037_v17, %v1026_v6  ;;  %v2412_v54 = vadd.f32 %v1249_v1, %v1113_v48  ;;  %v1030_v32 = vadd.f32 %v1029_v46, %v1025_v39  ;;  %v1250_v55 = vrot.slane %v1136_v33, 1  ;;  %v2497_v33 = vld [vmem:[#allocation11_spill] sm:$0xff] }
 0x40d   :  { %v1428_v30 = vpop.eup %1427  ;;  %v843_v56 = vadd.f32 1.0, %v1426_v0  ;;  %v1226_v42 = vadd.f32 %v1225_v62, %v1224_v15  ;;  %v1234_v38 = vadd.f32 %v1233_v2, %v1232_v12  ;;  %v1241_v25 = vrot.slane %v2417_v24, 1  ;;  %v2498_v24 = vld [vmem:[#allocation16_spill] sm:$0xff] }
 0x40e   :  { %v844_v26 = vadd.f32 1.0, %v1428_v30  ;;  %v1039_v37 = vrot.slane %v1038_v22, 4  ;;  %v1031_v14 = vrot.slane %v1030_v32, 4  ;;  %v1242_v49 = vrot.slane %v1080_v7, 1 }
 0x40f   :  { %1429 = vrcp.f32 %v843_v56  ;;  %v1227_v40 = vrot.slane %v1226_v42, 1  ;;  %v1235_v43 = vrot.slane %v1234_v38, 1  ;;  %v1254_v34 = vadd.f32 %v1250_v55, %v1114_v58  ;;  %v2499_v58 = vld [vmem:[#allocation12_spill] sm:$0xff] }
 0x410   :  { %1431 = vrcp.f32 %v844_v26  ;;  %v1040_v11 = vadd.f32 %v1039_v37, %v1038_v22  ;;  %v1032_v20 = vadd.f32 %v1031_v14, %v1030_v32  ;;  %v854_v5 = vand.u32 2147483647, %v843_v56 }
 0x411   :  { %v1228_v53 = vadd.f32 %v1227_v40, %v1226_v42  ;;  %v1236_v23 = vadd.f32 %v1235_v43, %v1234_v38  ;;  %v856_v27 = vand.u32 2147483648, %v843_v56  ;;  %v869_v29 = vand.u32 2147483647, %v844_v26  ;;  %v2496_v42 = vld [vmem:[#allocation15_spill] sm:$0xff]  ;;  %v2500_v43 = vld [vmem:[#allocation13_spill] sm:$0xff] }
 0x412   :  { %v1041_v47 = vrot.slane %v1040_v11, 2  ;;  %v1033_v8 = vrot.slane %v1032_v20, 2  ;;  %v871_v50 = vand.u32 2147483648, %v844_v26  ;;  %vm850_vm14 = vweird.f32 %v843_v56 }
 0x413   :  { %v1237_v21 = vmul.f32 %v1228_v53, %v2198_v18  ;;  %v1238_v45 = vmul.f32 %v1236_v23, %v2203_v63  ;;  %vm855_vm15 = vcmp.eq.f32.partialorder %v854_v5, 8.507059e+37  ;;  %vm865_vm0 = vweird.f32 %v844_v26  ;;  %v2501_v53 = vld [vmem:[#allocation14_spill] sm:$0xff]  ;;  %v2502_v23 = vld [vmem:[#allocation9_spill] sm:$0xff] }
 0x414   :  { %v1042_v60 = vadd.f32 %v1041_v47, %v1040_v11  ;;  %v1034_v13 = vadd.f32 %v1033_v8, %v1032_v20  ;;  %v857_v17 = vor.u32 1.1754944e-38, %v856_v27  ;;  %vm870_vm3 = vcmp.eq.f32.partialorder %v869_v29, 8.507059e+37 }
 0x415   :  { %v1430_v4 = vpop.eup %1429  ;;  %v1273_v51 = vrot.slane %v1237_v21, 2  ;;  %v1274_v1 = vrot.slane %v1238_v45, 2  ;;  %v1266_v31 = vrot.slane %v1254_v34, 2 }
 0x416   :  { %v1432_v61 = vpop.eup %1431  ;;  %v846_v57 = vmul.f32 %v1430_v4, %v843_v56  ;;  %v1043_v44 = vrot.slane %v1042_v60, 1  ;;  %vm851_vm12 = vweird.f32 %v1430_v4  ;;  %v1035_v19 = vrot.slane %v1034_v13, 1 }
 0x417   :  { %v861_v28 = vmul.f32 %v1432_v61, %v844_v26  ;;  %v1277_v9 = vadd.f32 %v1273_v51, %v2359_v16  ;;  %v1278_v41 = vadd.f32 %v1274_v1, %v2361_v59  ;;  %vm866_vm13 = vweird.f32 %v1432_v61  ;;  %vm852_vm1 = vmor %vm850_vm14, %vm851_vm12 }
 0x418   :  { %v847_v3 = vsub.f32 1.0, %v846_v57  ;;  %v1044_v10 = vadd.f32 %v1043_v44, %v1042_v60  ;;  %v1036_v62 = vadd.f32 %v1035_v19, %v1034_v13  ;;  %vm867_vm2 = vmor %vm865_vm0, %vm866_vm13  ;;  %v872_v16 = vor.u32 1.1754944e-38, %v871_v50 }
 0x419   :  { %v862_v35 = vsub.f32 1.0, %v861_v28  ;;  %v1282_v37 = vrot.slane %v1278_v41, 4 }
 0x41a   :  { %v848_v15 = vmul.f32 %v1430_v4, %v847_v3  ;;  %v1046_v39 = vmul.f32 %v1044_v10, %v2203_v63  ;;  %v1045_v22 = vmul.f32 %v1036_v62, %v2198_v18  ;;  %v1265_v63 = vrot.slane %v2412_v54, 2  ;;  %v2503_v54 = vld [vmem:[#allocation10_spill] sm:$0xff]  ;;  %v2504_v62 = vld [vmem:[#allocation20_spill] sm:$0xff] }
 0x41b   :  { %v863_v12 = vmul.f32 %v1432_v61, %v862_v35  ;;  %v1281_v18 = vrot.slane %v1277_v9, 4 }
 0x41c   :  { %v849_v6 = vadd.f32 %v1430_v4, %v848_v15  ;;  %v1246_v30 = vadd.f32 %v1242_v49, %v1046_v39  ;;  %v1245_v46 = vadd.f32 %v1241_v25, %v1045_v22 }
 0x41d   :  { %v864_v48 = vadd.f32 %v1432_v61, %v863_v12 }
 0x41e   :  { %v853_v0 = vsel %vm852_vm1, %v1430_v4, %v849_v6  ;;  %v1270_v26 = vadd.f32 %v1266_v31, %v1246_v30  ;;  %v1269_v14 = vadd.f32 %v1265_v63, %v1245_v46  ;;  %v2506_v31 = vld [vmem:[#allocation19_spill] sm:$0xff]  ;;  %v2510_v46 = vld [vmem:[#allocation21_spill] sm:$0xff] }
 0x41f   :  { %v858_v59 = vsel %vm855_vm15, %v857_v17, %v853_v0  ;;  %v868_v2 = vsel %vm867_vm2, %v1432_v61, %v864_v48  ;;  %v2505_v0 = vld [vmem:[#allocation18_spill] sm:$0xff]  ;;  %v2508_v30 = vld [vmem:[#allocation23_spill] sm:$0xff] }
 0x420   :  { %v873_v52 = vsel %vm870_vm3, %v872_v16, %v868_v2  ;;  %v875_v56 = vperm.slane %v858_v59, 0  ;;  %v1286_v11 = vadd.f32 %v1282_v37, %v1270_v26  ;;  %v1285_v49 = vadd.f32 %v1281_v18, %v1269_v14  ;;  %v2507_v2 = vld [vmem:[#allocation17_spill] sm:$0xff] }
 0x421   :  { %v876_v36 = vperm.slane %v873_v52, 0 }
 0x422   :  { %v877_v38 = vmul.f32 %v875_v56, %v2496_v42  ;;  %v879_v32 = vmul.f32 %v875_v56, %v2497_v33  ;;  %v881_v55 = vmul.f32 %v875_v56, %v2500_v43  ;;  %v883_v4 = vmul.f32 %v875_v56, %v2502_v23  ;;  %v2509_v56 = vld [vmem:[#allocation24_spill] sm:$0xff]  ;;  %v2511_v42 = vld [vmem:[#allocation22_spill] sm:$0xff] }
 0x423   :  { %v878_v7 = vmul.f32 %v876_v36, %v2498_v24  ;;  %v880_v40 = vmul.f32 %v876_v36, %v2499_v58  ;;  %v882_v25 = vmul.f32 %v876_v36, %v2501_v53  ;;  %v1371_v34 = vmul.f32 -1.442695, %v1286_v11 }
 0x424   :  { %885 = vst [vmem:[#allocation5] sm:$0xff] %v877_v38  ;;  %v884_v20 = vmul.f32 %v876_v36, %v2503_v54  ;;  %v1370_v47 = vmul.f32 -1.442695, %v1285_v49 }
 0x425   :  { %886 = vst [vmem:[#allocation5 + $0x8] sm:$0xff] %v878_v7  ;;  %1433 = vpow2.f32 %v1371_v34 }
 0x426   :  { %887 = vst [vmem:[#allocation5 + $0x10] sm:$0xff] %v879_v32  ;;  %1435 = vpow2.f32 %v1370_v47 }
 0x427   :  { %888 = vst [vmem:[#allocation5 + $0x18] sm:$0xff] %v880_v40 }
 0x428   :  { %889 = vst [vmem:[#allocation5 + $0x20] sm:$0xff] %v881_v55 }
 0x429   :  { %890 = vst [vmem:[#allocation5 + $0x28] sm:$0xff] %v882_v25 }
 0x42a   :  { %891 = vst [vmem:[#allocation5 + $0x30] sm:$0xff] %v883_v4 }
 0x42b   :  { %892 = vst [vmem:[#allocation5 + $0x38] sm:$0xff] %v884_v20  ;;  %v1434_v61 = vpop.eup %1433 }
 0x42c   :  { %v1294_v57 = vadd.f32 1.0, %v1434_v61  ;;  %v1436_v5 = vpop.eup %1435 }
 0x42d   :  { %v1293_v21 = vadd.f32 1.0, %v1436_v5 }
 0x42e   :  { %1437 = vrcp.f32 %v1294_v57  ;;  %v1321_v3 = vand.u32 2147483648, %v1294_v57  ;;  %v1319_v1 = vand.u32 2147483647, %v1294_v57  ;;  %vm1315_vm5 = vweird.f32 %v1294_v57 }
 0x42f   :  { %1439 = vrcp.f32 %v1293_v21  ;;  %v1306_v35 = vand.u32 2147483648, %v1293_v21  ;;  %v1304_v13 = vand.u32 2147483647, %v1293_v21  ;;  %vm1300_vm8 = vweird.f32 %v1293_v21 }
 0x430   :  { %v1322_v15 = vor.u32 1.1754944e-38, %v1321_v3  ;;  %vm1320_vm9 = vcmp.eq.f32.partialorder %v1319_v1, 8.507059e+37 }
 0x431   :  { %v1307_v12 = vor.u32 1.1754944e-38, %v1306_v35  ;;  %vm1305_vm11 = vcmp.eq.f32.partialorder %v1304_v13, 8.507059e+37 }
 0x434   :  { %v1438_v45 = vpop.eup %1437 }
 0x435   :  { %v1311_v27 = vmul.f32 %v1438_v45, %v1294_v57  ;;  %v1440_v28 = vpop.eup %1439  ;;  %vm1316_vm4 = vweird.f32 %v1438_v45 }
 0x436   :  { %v1296_v8 = vmul.f32 %v1440_v28, %v1293_v21  ;;  %vm1301_vm6 = vweird.f32 %v1440_v28  ;;  %vm1317_vm7 = vmor %vm1315_vm5, %vm1316_vm4 }
 0x437   :  { %v1312_v60 = vsub.f32 1.0, %v1311_v27  ;;  %vm1302_vm10 = vmor %vm1300_vm8, %vm1301_vm6 }
 0x438   :  { %v1297_v29 = vsub.f32 1.0, %v1296_v8 }
 0x439   :  { %v1313_v51 = vmul.f32 %v1438_v45, %v1312_v60 }
 0x43a   :  { %v1298_v50 = vmul.f32 %v1440_v28, %v1297_v29 }
 0x43b   :  { %v1314_v44 = vadd.f32 %v1438_v45, %v1313_v51 }
 0x43c   :  { %v1299_v9 = vadd.f32 %v1440_v28, %v1298_v50 }
 0x43d   :  { %v1318_v41 = vsel %vm1317_vm7, %v1438_v45, %v1314_v44 }
 0x43e   :  { %v1323_v19 = vsel %vm1320_vm9, %v1322_v15, %v1318_v41  ;;  %v1303_v10 = vsel %vm1302_vm10, %v1440_v28, %v1299_v9 }
 0x43f   :  { %v1326_v6 = vperm.slane %v1323_v19, 0  ;;  %v1308_v17 = vsel %vm1305_vm11, %v1307_v12, %v1303_v10 }
 0x440   :  { %v1325_v48 = vperm.slane %v1308_v17, 0 }
 0x441   :  { %v1328_v39 = vmul.f32 %v1326_v6, %v2504_v62  ;;  %v1330_v16 = vmul.f32 %v1326_v6, %v2505_v0  ;;  %v1332_v36 = vmul.f32 %v1326_v6, %v2509_v56  ;;  %v1334_v38 = vmul.f32 %v1326_v6, %v2511_v42 }
 0x442   :  { %v1327_v59 = vmul.f32 %v1325_v48, %v2506_v31  ;;  %v1329_v22 = vmul.f32 %v1325_v48, %v2507_v2  ;;  %v1331_v52 = vmul.f32 %v1325_v48, %v2508_v30  ;;  %v1333_v26 = vmul.f32 %v1325_v48, %v2510_v46 }
 0x443   :  { %1337 = vst [vmem:[#allocation5 + $0x48] sm:$0xff] %v1328_v39 }
 0x444   :  { %1339 = vst [vmem:[#allocation5 + $0x58] sm:$0xff] %v1330_v16 }
 0x445   :  { %1336 = vst [vmem:[#allocation5 + $0x40] sm:$0xff] %v1327_v59 }
 0x446   :  { %1338 = vst [vmem:[#allocation5 + $0x50] sm:$0xff] %v1329_v22 }
 0x447   :  { %1340 = vst [vmem:[#allocation5 + $0x60] sm:$0xff] %v1331_v52 }
 0x448   :  { %1341 = vst [vmem:[#allocation5 + $0x68] sm:$0xff] %v1332_v36 }
 0x449   :  { %1342 = vst [vmem:[#allocation5 + $0x70] sm:$0xff] %v1333_v26 }
 0x44a   :  { %1343 = vst [vmem:[#allocation5 + $0x78] sm:$0xff] %v1334_v38 }
 0x44b   :  { %1356 = dma.vmem_to_hbm [thread:$0]  %s1349_s6, 2048, %s1351_s5, [#allocation4], %s1494_s10, %s1494_s10, %s1495_s11  }
 0x44c   :  { %1491 = dma.done.wait [#allocation4], 2048  }
 0x44d   :  { %1492 = vsyncadd [#allocation4], 4294965248 }
 0x44e   :  { %1361 = vsyncpa [#allocation3], 1 }
 0x44f   :  { %1362 = vsyncpa [#allocation4], 1 }

</bundles_post_ra>
